<compile_context>
chip_gen: v5e
topology: v5e:2x2
jax: 0.10.0
libtpu: 0.0.40
codegen_flags: <defaults>
</compile_context>

<pallas_src>
import jax
import jax.numpy as jnp
from jax import lax
from jax.experimental import pallas as pl
from jax.experimental.pallas import tpu as pltpu

MAX_NORM = 5.0


def word2vec_kernel(idx_ref,          # SMEM (B, L) int32   -- scalar prefetch
                    emb_hbm,          # HBM  (V, D) f32     -- memory_space=pl.ANY
                    w_ref,            # VMEM (D, TV) f32    -- fc weight tile (pre-transposed)
                    b_ref,            # VMEM (1, TV) f32    -- fc bias tile
                    out_ref,          # VMEM (B, TV) f32    -- output tile
                    gather_buf,       # VMEM (B*L, D) f32 scratch
                    avg_ref,          # VMEM (B, D) f32 scratch (persists across grid)
                    sems):            # DMA semaphores (B*L,)
    B, L = idx_ref.shape
    BL, D = gather_buf.shape

    # ---- Stage 1 (only once, at the first V tile): gather + renorm + mean ----
    @pl.when(pl.program_id(0) == 0)
    def _gather_and_average():
        # One small DMA per token: copy row emb[tok] from HBM into VMEM.
        copies = []
        for r in range(BL):                       # BL is small & static -> unrolled
            tok = idx_ref[r // L, r % L]          # scalar read from SMEM
            cp = pltpu.make_async_copy(
                emb_hbm.at[pl.ds(tok, 1), :],     # (1, D) row in HBM
                gather_buf.at[pl.ds(r, 1), :],    # (1, D) row in VMEM
                sems.at[r])
            cp.start()
            copies.append(cp)
        for cp in copies:
            cp.wait()

        rows = gather_buf[...]                                        # (B*L, D)
        # max_norm=5.0: rescale rows whose L2 norm exceeds MAX_NORM.
        ss = jnp.sum(rows * rows, axis=-1, keepdims=True)             # (B*L, 1)
        scale = jnp.where(ss > MAX_NORM * MAX_NORM,
                          MAX_NORM * lax.rsqrt(jnp.maximum(ss, 1e-12)),
                          1.0)
        rows = rows * scale
        # TODO(synk): PyTorch max_norm renormalizes the embedding table in place;
        # here only the forward activations are scaled (forward output identical).
        avg_ref[...] = jnp.mean(rows.reshape(B, L, D), axis=1)        # (B, D)

    # ---- Stage 2 (every V tile): y_tile = avg @ W_t[:, tile] + b[tile] ----
    out_ref[...] = (jnp.dot(avg_ref[...], w_ref[...],
                            preferred_element_type=jnp.float32)
                    + b_ref[...])


def word2vec_forward(x, emb_weight, fc_weight, fc_bias, *, tv=128):
    B, L = x.shape
    V, D = emb_weight.shape
    assert V % tv == 0, "vocab size must be a multiple of the V tile"

    w_t = fc_weight.T                 # (D, V): one-time layout change, K-major RHS
    b2 = fc_bias.reshape(1, V)

    return pl.pallas_call(
        word2vec_kernel,
        out_shape=jax.ShapeDtypeStruct((B, V), jnp.float32),
        grid_spec=pltpu.PrefetchScalarGridSpec(
            num_scalar_prefetch=1,                       # x -> SMEM
            grid=(V // tv,),
            in_specs=[
                pl.BlockSpec(memory_space=pl.ANY),                # emb table stays in HBM
                pl.BlockSpec((D, tv), lambda j, idx: (0, j)),     # fc weight tile
                pl.BlockSpec((1, tv), lambda j, idx: (0, j)),     # bias tile
            ],
            out_specs=pl.BlockSpec((B, tv), lambda j, idx: (0, j)),
            scratch_shapes=[
                pltpu.VMEM((B * L, D), jnp.float32),   # gathered embedding rows
                pltpu.VMEM((B, D), jnp.float32),       # cached sequence-mean
                pltpu.SemaphoreType.DMA((B * L,)),     # per-row gather semaphores
            ],
        ),
        compiler_params=pltpu.CompilerParams(
            # avg is computed at program 0 and reused by later tiles, so the V axis
            # must run sequentially on one core ("arbitrary", not megacore-split).
            dimension_semantics=("arbitrary",),
            vmem_limit_bytes=32 * 1024 * 1024,
        ),
    )(x.astype(jnp.int32), emb_weight, w_t, b2)


def reference_forward(x, emb_weight, fc_weight, fc_bias):
    emb = emb_weight[x]                                                # (B, L, D)
    norm = jnp.linalg.norm(emb, axis=-1, keepdims=True)
    emb = emb * jnp.where(norm > MAX_NORM, MAX_NORM / norm, 1.0)
    avg = emb.mean(axis=1)                                             # (B, D)
    return avg @ fc_weight.T + fc_bias                                 # (B, V)


if __name__ == "__main__":
    # Small, deterministic setup (lane/sublane aligned: D=128, V=256, B*L=16).
    vocab_size, embedding_dim, padding_idx = 256, 128, 0
    B, L = 2, 8

    key = jax.random.PRNGKey(0)
    k_emb, k_w, k_b, k_x = jax.random.split(key, 4)

    # nn.Embedding default init: N(0, 1); padding_idx row zeroed.
    emb_weight = jax.random.normal(k_emb, (vocab_size, embedding_dim), jnp.float32)
    emb_weight = emb_weight.at[padding_idx].set(0.0)

    # nn.Linear default init: U(-1/sqrt(in), 1/sqrt(in)).
    bound = 1.0 / (embedding_dim ** 0.5)
    fc_weight = jax.random.uniform(k_w, (vocab_size, embedding_dim), jnp.float32, -bound, bound)
    fc_bias = jax.random.uniform(k_b, (vocab_size,), jnp.float32, -bound, bound)

    # Token indices (include some padding_idx tokens).
    x = jax.random.randint(k_x, (B, L), 0, vocab_size, jnp.int32)
    x = x.at[0, 0].set(padding_idx)

    y = word2vec_forward(x, emb_weight, fc_weight, fc_bias)
    jax.block_until_ready(y)

    y_ref = reference_forward(x, emb_weight, fc_weight, fc_bias)
    assert y.shape == (B, vocab_size)
    assert jnp.allclose(y, y_ref, atol=1e-4, rtol=1e-4), "mismatch vs reference"

    print("KERNEL_OK")
</pallas_src>

<mosaic_0001>
module attributes {stable_mosaic.version = 11 : i64} {
  func.func @word2vec_kernel(%arg0: i32, %arg1: memref<2x8xi32, #tpu.memory_space<smem>>, %arg2: memref<256x128xf32, #tpu.memory_space<any>>, %arg3: memref<128x128xf32, #tpu.memory_space<vmem>>, %arg4: memref<1x128xf32, #tpu.memory_space<vmem>>, %arg5: memref<2x128xf32, #tpu.memory_space<vmem>>, %arg6: memref<16x128xf32, #tpu.memory_space<vmem>>, %arg7: memref<2x128xf32, #tpu.memory_space<vmem>>, %arg8: memref<16x!tpu.dma_semaphore, #tpu.memory_space<semaphore_mem>>) attributes {dimension_semantics = [#tpu.dimension_semantics<arbitrary>], iteration_bounds = array<i64: 2>, scalar_prefetch = 1 : i64, scratch_operands = 3 : i64, tpu.core_type = #tpu.core_type<tc>, window_params = [{}, {transform_indices = @transform_1, window_bounds = array<i64: 128, 128>}, {transform_indices = @transform_2, window_bounds = array<i64: 1, 128>}, {transform_indices = @transform_3, window_bounds = array<i64: 2, 128>}]} {
    %c0_i32 = arith.constant 0 : i32
    %0 = arith.cmpi eq, %arg0, %c0_i32 : i32
    %1 = arith.extui %0 : i1 to i32
    %c0_i32_0 = arith.constant 0 : i32
    %2 = arith.cmpi ne, %1, %c0_i32_0 : i32
    scf.if %2 {
      %c0_8 = arith.constant 0 : index
      %c0_9 = arith.constant 0 : index
      %10 = memref.load %arg1[%c0_8, %c0_9] : memref<2x8xi32, #tpu.memory_space<smem>>
      %c0_i32_10 = arith.constant 0 : i32
      %c0_i32_11 = arith.constant 0 : i32
      %11 = tpu.memref_slice %arg2[%10, %c0_i32_11] : memref<256x128xf32, #tpu.memory_space<any>> -> memref<1x128xf32, #tpu.memory_space<any>>
      %c0_i32_12 = arith.constant 0 : i32
      %c0_i32_13 = arith.constant 0 : i32
      %12 = tpu.memref_slice %arg6[%c0_i32_12, %c0_i32_13] : memref<16x128xf32, #tpu.memory_space<vmem>> -> memref<1x128xf32, #tpu.memory_space<vmem>>
      %13 = tpu.memref_slice %arg8[%c0_i32_10] : memref<16x!tpu.dma_semaphore, #tpu.memory_space<semaphore_mem>> -> memref<1x!tpu.dma_semaphore, #tpu.memory_space<semaphore_mem>>
      %14 = tpu.memref_squeeze %13 : memref<1x!tpu.dma_semaphore, #tpu.memory_space<semaphore_mem>> -> memref<!tpu.dma_semaphore, #tpu.memory_space<semaphore_mem>>
      tpu.enqueue_dma source(%11 : memref<1x128xf32, #tpu.memory_space<any>>) target(%12 : memref<1x128xf32, #tpu.memory_space<vmem>>) target_semaphore(%14 : memref<!tpu.dma_semaphore, #tpu.memory_space<semaphore_mem>>)
      %c0_14 = arith.constant 0 : index
      %c1 = arith.constant 1 : index
      %15 = memref.load %arg1[%c0_14, %c1] : memref<2x8xi32, #tpu.memory_space<smem>>
      %c1_i32 = arith.constant 1 : i32
      %c0_i32_15 = arith.constant 0 : i32
      %16 = tpu.memref_slice %arg2[%15, %c0_i32_15] : memref<256x128xf32, #tpu.memory_space<any>> -> memref<1x128xf32, #tpu.memory_space<any>>
      %c1_i32_16 = arith.constant 1 : i32
      %c0_i32_17 = arith.constant 0 : i32
      %17 = tpu.memref_slice %arg6[%c1_i32_16, %c0_i32_17] : memref<16x128xf32, #tpu.memory_space<vmem>> -> memref<1x128xf32, #tpu.memory_space<vmem>>
      %18 = tpu.memref_slice %arg8[%c1_i32] : memref<16x!tpu.dma_semaphore, #tpu.memory_space<semaphore_mem>> -> memref<1x!tpu.dma_semaphore, #tpu.memory_space<semaphore_mem>>
      %19 = tpu.memref_squeeze %18 : memref<1x!tpu.dma_semaphore, #tpu.memory_space<semaphore_mem>> -> memref<!tpu.dma_semaphore, #tpu.memory_space<semaphore_mem>>
      tpu.enqueue_dma source(%16 : memref<1x128xf32, #tpu.memory_space<any>>) target(%17 : memref<1x128xf32, #tpu.memory_space<vmem>>) target_semaphore(%19 : memref<!tpu.dma_semaphore, #tpu.memory_space<semaphore_mem>>)
      %c0_18 = arith.constant 0 : index
      %c2 = arith.constant 2 : index
      %20 = memref.load %arg1[%c0_18, %c2] : memref<2x8xi32, #tpu.memory_space<smem>>
      %c2_i32 = arith.constant 2 : i32
      %c0_i32_19 = arith.constant 0 : i32
      %21 = tpu.memref_slice %arg2[%20, %c0_i32_19] : memref<256x128xf32, #tpu.memory_space<any>> -> memref<1x128xf32, #tpu.memory_space<any>>
      %c2_i32_20 = arith.constant 2 : i32
      %c0_i32_21 = arith.constant 0 : i32
      %22 = tpu.memref_slice %arg6[%c2_i32_20, %c0_i32_21] : memref<16x128xf32, #tpu.memory_space<vmem>> -> memref<1x128xf32, #tpu.memory_space<vmem>>
      %23 = tpu.memref_slice %arg8[%c2_i32] : memref<16x!tpu.dma_semaphore, #tpu.memory_space<semaphore_mem>> -> memref<1x!tpu.dma_semaphore, #tpu.memory_space<semaphore_mem>>
      %24 = tpu.memref_squeeze %23 : memref<1x!tpu.dma_semaphore, #tpu.memory_space<semaphore_mem>> -> memref<!tpu.dma_semaphore, #tpu.memory_space<semaphore_mem>>
      tpu.enqueue_dma source(%21 : memref<1x128xf32, #tpu.memory_space<any>>) target(%22 : memref<1x128xf32, #tpu.memory_space<vmem>>) target_semaphore(%24 : memref<!tpu.dma_semaphore, #tpu.memory_space<semaphore_mem>>)
      %c0_22 = arith.constant 0 : index
      %c3 = arith.constant 3 : index
      %25 = memref.load %arg1[%c0_22, %c3] : memref<2x8xi32, #tpu.memory_space<smem>>
      %c3_i32 = arith.constant 3 : i32
      %c0_i32_23 = arith.constant 0 : i32
      %26 = tpu.memref_slice %arg2[%25, %c0_i32_23] : memref<256x128xf32, #tpu.memory_space<any>> -> memref<1x128xf32, #tpu.memory_space<any>>
      %c3_i32_24 = arith.constant 3 : i32
      %c0_i32_25 = arith.constant 0 : i32
      %27 = tpu.memref_slice %arg6[%c3_i32_24, %c0_i32_25] : memref<16x128xf32, #tpu.memory_space<vmem>> -> memref<1x128xf32, #tpu.memory_space<vmem>>
      %28 = tpu.memref_slice %arg8[%c3_i32] : memref<16x!tpu.dma_semaphore, #tpu.memory_space<semaphore_mem>> -> memref<1x!tpu.dma_semaphore, #tpu.memory_space<semaphore_mem>>
      %29 = tpu.memref_squeeze %28 : memref<1x!tpu.dma_semaphore, #tpu.memory_space<semaphore_mem>> -> memref<!tpu.dma_semaphore, #tpu.memory_space<semaphore_mem>>
      tpu.enqueue_dma source(%26 : memref<1x128xf32, #tpu.memory_space<any>>) target(%27 : memref<1x128xf32, #tpu.memory_space<vmem>>) target_semaphore(%29 : memref<!tpu.dma_semaphore, #tpu.memory_space<semaphore_mem>>)
      %c0_26 = arith.constant 0 : index
      %c4 = arith.constant 4 : index
      %30 = memref.load %arg1[%c0_26, %c4] : memref<2x8xi32, #tpu.memory_space<smem>>
      %c4_i32 = arith.constant 4 : i32
      %c0_i32_27 = arith.constant 0 : i32
      %31 = tpu.memref_slice %arg2[%30, %c0_i32_27] : memref<256x128xf32, #tpu.memory_space<any>> -> memref<1x128xf32, #tpu.memory_space<any>>
      %c4_i32_28 = arith.constant 4 : i32
      %c0_i32_29 = arith.constant 0 : i32
      %32 = tpu.memref_slice %arg6[%c4_i32_28, %c0_i32_29] : memref<16x128xf32, #tpu.memory_space<vmem>> -> memref<1x128xf32, #tpu.memory_space<vmem>>
      %33 = tpu.memref_slice %arg8[%c4_i32] : memref<16x!tpu.dma_semaphore, #tpu.memory_space<semaphore_mem>> -> memref<1x!tpu.dma_semaphore, #tpu.memory_space<semaphore_mem>>
      %34 = tpu.memref_squeeze %33 : memref<1x!tpu.dma_semaphore, #tpu.memory_space<semaphore_mem>> -> memref<!tpu.dma_semaphore, #tpu.memory_space<semaphore_mem>>
      tpu.enqueue_dma source(%31 : memref<1x128xf32, #tpu.memory_space<any>>) target(%32 : memref<1x128xf32, #tpu.memory_space<vmem>>) target_semaphore(%34 : memref<!tpu.dma_semaphore, #tpu.memory_space<semaphore_mem>>)
      %c0_30 = arith.constant 0 : index
      %c5 = arith.constant 5 : index
      %35 = memref.load %arg1[%c0_30, %c5] : memref<2x8xi32, #tpu.memory_space<smem>>
      %c5_i32 = arith.constant 5 : i32
      %c0_i32_31 = arith.constant 0 : i32
      %36 = tpu.memref_slice %arg2[%35, %c0_i32_31] : memref<256x128xf32, #tpu.memory_space<any>> -> memref<1x128xf32, #tpu.memory_space<any>>
      %c5_i32_32 = arith.constant 5 : i32
      %c0_i32_33 = arith.constant 0 : i32
      %37 = tpu.memref_slice %arg6[%c5_i32_32, %c0_i32_33] : memref<16x128xf32, #tpu.memory_space<vmem>> -> memref<1x128xf32, #tpu.memory_space<vmem>>
      %38 = tpu.memref_slice %arg8[%c5_i32] : memref<16x!tpu.dma_semaphore, #tpu.memory_space<semaphore_mem>> -> memref<1x!tpu.dma_semaphore, #tpu.memory_space<semaphore_mem>>
      %39 = tpu.memref_squeeze %38 : memref<1x!tpu.dma_semaphore, #tpu.memory_space<semaphore_mem>> -> memref<!tpu.dma_semaphore, #tpu.memory_space<semaphore_mem>>
      tpu.enqueue_dma source(%36 : memref<1x128xf32, #tpu.memory_space<any>>) target(%37 : memref<1x128xf32, #tpu.memory_space<vmem>>) target_semaphore(%39 : memref<!tpu.dma_semaphore, #tpu.memory_space<semaphore_mem>>)
      %c0_34 = arith.constant 0 : index
      %c6 = arith.constant 6 : index
      %40 = memref.load %arg1[%c0_34, %c6] : memref<2x8xi32, #tpu.memory_space<smem>>
      %c6_i32 = arith.constant 6 : i32
      %c0_i32_35 = arith.constant 0 : i32
      %41 = tpu.memref_slice %arg2[%40, %c0_i32_35] : memref<256x128xf32, #tpu.memory_space<any>> -> memref<1x128xf32, #tpu.memory_space<any>>
      %c6_i32_36 = arith.constant 6 : i32
      %c0_i32_37 = arith.constant 0 : i32
      %42 = tpu.memref_slice %arg6[%c6_i32_36, %c0_i32_37] : memref<16x128xf32, #tpu.memory_space<vmem>> -> memref<1x128xf32, #tpu.memory_space<vmem>>
      %43 = tpu.memref_slice %arg8[%c6_i32] : memref<16x!tpu.dma_semaphore, #tpu.memory_space<semaphore_mem>> -> memref<1x!tpu.dma_semaphore, #tpu.memory_space<semaphore_mem>>
      %44 = tpu.memref_squeeze %43 : memref<1x!tpu.dma_semaphore, #tpu.memory_space<semaphore_mem>> -> memref<!tpu.dma_semaphore, #tpu.memory_space<semaphore_mem>>
      tpu.enqueue_dma source(%41 : memref<1x128xf32, #tpu.memory_space<any>>) target(%42 : memref<1x128xf32, #tpu.memory_space<vmem>>) target_semaphore(%44 : memref<!tpu.dma_semaphore, #tpu.memory_space<semaphore_mem>>)
      %c0_38 = arith.constant 0 : index
      %c7 = arith.constant 7 : index
      %45 = memref.load %arg1[%c0_38, %c7] : memref<2x8xi32, #tpu.memory_space<smem>>
      %c7_i32 = arith.constant 7 : i32
      %c0_i32_39 = arith.constant 0 : i32
      %46 = tpu.memref_slice %arg2[%45, %c0_i32_39] : memref<256x128xf32, #tpu.memory_space<any>> -> memref<1x128xf32, #tpu.memory_space<any>>
      %c7_i32_40 = arith.constant 7 : i32
      %c0_i32_41 = arith.constant 0 : i32
      %47 = tpu.memref_slice %arg6[%c7_i32_40, %c0_i32_41] : memref<16x128xf32, #tpu.memory_space<vmem>> -> memref<1x128xf32, #tpu.memory_space<vmem>>
      %48 = tpu.memref_slice %arg8[%c7_i32] : memref<16x!tpu.dma_semaphore, #tpu.memory_space<semaphore_mem>> -> memref<1x!tpu.dma_semaphore, #tpu.memory_space<semaphore_mem>>
      %49 = tpu.memref_squeeze %48 : memref<1x!tpu.dma_semaphore, #tpu.memory_space<semaphore_mem>> -> memref<!tpu.dma_semaphore, #tpu.memory_space<semaphore_mem>>
      tpu.enqueue_dma source(%46 : memref<1x128xf32, #tpu.memory_space<any>>) target(%47 : memref<1x128xf32, #tpu.memory_space<vmem>>) target_semaphore(%49 : memref<!tpu.dma_semaphore, #tpu.memory_space<semaphore_mem>>)
      %c1_42 = arith.constant 1 : index
      %c0_43 = arith.constant 0 : index
      %50 = memref.load %arg1[%c1_42, %c0_43] : memref<2x8xi32, #tpu.memory_space<smem>>
      %c8_i32 = arith.constant 8 : i32
      %c0_i32_44 = arith.constant 0 : i32
      %51 = tpu.memref_slice %arg2[%50, %c0_i32_44] : memref<256x128xf32, #tpu.memory_space<any>> -> memref<1x128xf32, #tpu.memory_space<any>>
      %c8_i32_45 = arith.constant 8 : i32
      %c0_i32_46 = arith.constant 0 : i32
      %52 = tpu.memref_slice %arg6[%c8_i32_45, %c0_i32_46] : memref<16x128xf32, #tpu.memory_space<vmem>> -> memref<1x128xf32, #tpu.memory_space<vmem>>
      %53 = tpu.memref_slice %arg8[%c8_i32] : memref<16x!tpu.dma_semaphore, #tpu.memory_space<semaphore_mem>> -> memref<1x!tpu.dma_semaphore, #tpu.memory_space<semaphore_mem>>
      %54 = tpu.memref_squeeze %53 : memref<1x!tpu.dma_semaphore, #tpu.memory_space<semaphore_mem>> -> memref<!tpu.dma_semaphore, #tpu.memory_space<semaphore_mem>>
      tpu.enqueue_dma source(%51 : memref<1x128xf32, #tpu.memory_space<any>>) target(%52 : memref<1x128xf32, #tpu.memory_space<vmem>>) target_semaphore(%54 : memref<!tpu.dma_semaphore, #tpu.memory_space<semaphore_mem>>)
      %c1_47 = arith.constant 1 : index
      %c1_48 = arith.constant 1 : index
      %55 = memref.load %arg1[%c1_47, %c1_48] : memref<2x8xi32, #tpu.memory_space<smem>>
      %c9_i32 = arith.constant 9 : i32
      %c0_i32_49 = arith.constant 0 : i32
      %56 = tpu.memref_slice %arg2[%55, %c0_i32_49] : memref<256x128xf32, #tpu.memory_space<any>> -> memref<1x128xf32, #tpu.memory_space<any>>
      %c9_i32_50 = arith.constant 9 : i32
      %c0_i32_51 = arith.constant 0 : i32
      %57 = tpu.memref_slice %arg6[%c9_i32_50, %c0_i32_51] : memref<16x128xf32, #tpu.memory_space<vmem>> -> memref<1x128xf32, #tpu.memory_space<vmem>>
      %58 = tpu.memref_slice %arg8[%c9_i32] : memref<16x!tpu.dma_semaphore, #tpu.memory_space<semaphore_mem>> -> memref<1x!tpu.dma_semaphore, #tpu.memory_space<semaphore_mem>>
      %59 = tpu.memref_squeeze %58 : memref<1x!tpu.dma_semaphore, #tpu.memory_space<semaphore_mem>> -> memref<!tpu.dma_semaphore, #tpu.memory_space<semaphore_mem>>
      tpu.enqueue_dma source(%56 : memref<1x128xf32, #tpu.memory_space<any>>) target(%57 : memref<1x128xf32, #tpu.memory_space<vmem>>) target_semaphore(%59 : memref<!tpu.dma_semaphore, #tpu.memory_space<semaphore_mem>>)
      %c1_52 = arith.constant 1 : index
      %c2_53 = arith.constant 2 : index
      %60 = memref.load %arg1[%c1_52, %c2_53] : memref<2x8xi32, #tpu.memory_space<smem>>
      %c10_i32 = arith.constant 10 : i32
      %c0_i32_54 = arith.constant 0 : i32
      %61 = tpu.memref_slice %arg2[%60, %c0_i32_54] : memref<256x128xf32, #tpu.memory_space<any>> -> memref<1x128xf32, #tpu.memory_space<any>>
      %c10_i32_55 = arith.constant 10 : i32
      %c0_i32_56 = arith.constant 0 : i32
      %62 = tpu.memref_slice %arg6[%c10_i32_55, %c0_i32_56] : memref<16x128xf32, #tpu.memory_space<vmem>> -> memref<1x128xf32, #tpu.memory_space<vmem>>
      %63 = tpu.memref_slice %arg8[%c10_i32] : memref<16x!tpu.dma_semaphore, #tpu.memory_space<semaphore_mem>> -> memref<1x!tpu.dma_semaphore, #tpu.memory_space<semaphore_mem>>
      %64 = tpu.memref_squeeze %63 : memref<1x!tpu.dma_semaphore, #tpu.memory_space<semaphore_mem>> -> memref<!tpu.dma_semaphore, #tpu.memory_space<semaphore_mem>>
      tpu.enqueue_dma source(%61 : memref<1x128xf32, #tpu.memory_space<any>>) target(%62 : memref<1x128xf32, #tpu.memory_space<vmem>>) target_semaphore(%64 : memref<!tpu.dma_semaphore, #tpu.memory_space<semaphore_mem>>)
      %c1_57 = arith.constant 1 : index
      %c3_58 = arith.constant 3 : index
      %65 = memref.load %arg1[%c1_57, %c3_58] : memref<2x8xi32, #tpu.memory_space<smem>>
      %c11_i32 = arith.constant 11 : i32
      %c0_i32_59 = arith.constant 0 : i32
      %66 = tpu.memref_slice %arg2[%65, %c0_i32_59] : memref<256x128xf32, #tpu.memory_space<any>> -> memref<1x128xf32, #tpu.memory_space<any>>
      %c11_i32_60 = arith.constant 11 : i32
      %c0_i32_61 = arith.constant 0 : i32
      %67 = tpu.memref_slice %arg6[%c11_i32_60, %c0_i32_61] : memref<16x128xf32, #tpu.memory_space<vmem>> -> memref<1x128xf32, #tpu.memory_space<vmem>>
      %68 = tpu.memref_slice %arg8[%c11_i32] : memref<16x!tpu.dma_semaphore, #tpu.memory_space<semaphore_mem>> -> memref<1x!tpu.dma_semaphore, #tpu.memory_space<semaphore_mem>>
      %69 = tpu.memref_squeeze %68 : memref<1x!tpu.dma_semaphore, #tpu.memory_space<semaphore_mem>> -> memref<!tpu.dma_semaphore, #tpu.memory_space<semaphore_mem>>
      tpu.enqueue_dma source(%66 : memref<1x128xf32, #tpu.memory_space<any>>) target(%67 : memref<1x128xf32, #tpu.memory_space<vmem>>) target_semaphore(%69 : memref<!tpu.dma_semaphore, #tpu.memory_space<semaphore_mem>>)
      %c1_62 = arith.constant 1 : index
      %c4_63 = arith.constant 4 : index
      %70 = memref.load %arg1[%c1_62, %c4_63] : memref<2x8xi32, #tpu.memory_space<smem>>
      %c12_i32 = arith.constant 12 : i32
      %c0_i32_64 = arith.constant 0 : i32
      %71 = tpu.memref_slice %arg2[%70, %c0_i32_64] : memref<256x128xf32, #tpu.memory_space<any>> -> memref<1x128xf32, #tpu.memory_space<any>>
      %c12_i32_65 = arith.constant 12 : i32
      %c0_i32_66 = arith.constant 0 : i32
      %72 = tpu.memref_slice %arg6[%c12_i32_65, %c0_i32_66] : memref<16x128xf32, #tpu.memory_space<vmem>> -> memref<1x128xf32, #tpu.memory_space<vmem>>
      %73 = tpu.memref_slice %arg8[%c12_i32] : memref<16x!tpu.dma_semaphore, #tpu.memory_space<semaphore_mem>> -> memref<1x!tpu.dma_semaphore, #tpu.memory_space<semaphore_mem>>
      %74 = tpu.memref_squeeze %73 : memref<1x!tpu.dma_semaphore, #tpu.memory_space<semaphore_mem>> -> memref<!tpu.dma_semaphore, #tpu.memory_space<semaphore_mem>>
      tpu.enqueue_dma source(%71 : memref<1x128xf32, #tpu.memory_space<any>>) target(%72 : memref<1x128xf32, #tpu.memory_space<vmem>>) target_semaphore(%74 : memref<!tpu.dma_semaphore, #tpu.memory_space<semaphore_mem>>)
      %c1_67 = arith.constant 1 : index
      %c5_68 = arith.constant 5 : index
      %75 = memref.load %arg1[%c1_67, %c5_68] : memref<2x8xi32, #tpu.memory_space<smem>>
      %c13_i32 = arith.constant 13 : i32
      %c0_i32_69 = arith.constant 0 : i32
      %76 = tpu.memref_slice %arg2[%75, %c0_i32_69] : memref<256x128xf32, #tpu.memory_space<any>> -> memref<1x128xf32, #tpu.memory_space<any>>
      %c13_i32_70 = arith.constant 13 : i32
      %c0_i32_71 = arith.constant 0 : i32
      %77 = tpu.memref_slice %arg6[%c13_i32_70, %c0_i32_71] : memref<16x128xf32, #tpu.memory_space<vmem>> -> memref<1x128xf32, #tpu.memory_space<vmem>>
      %78 = tpu.memref_slice %arg8[%c13_i32] : memref<16x!tpu.dma_semaphore, #tpu.memory_space<semaphore_mem>> -> memref<1x!tpu.dma_semaphore, #tpu.memory_space<semaphore_mem>>
      %79 = tpu.memref_squeeze %78 : memref<1x!tpu.dma_semaphore, #tpu.memory_space<semaphore_mem>> -> memref<!tpu.dma_semaphore, #tpu.memory_space<semaphore_mem>>
      tpu.enqueue_dma source(%76 : memref<1x128xf32, #tpu.memory_space<any>>) target(%77 : memref<1x128xf32, #tpu.memory_space<vmem>>) target_semaphore(%79 : memref<!tpu.dma_semaphore, #tpu.memory_space<semaphore_mem>>)
      %c1_72 = arith.constant 1 : index
      %c6_73 = arith.constant 6 : index
      %80 = memref.load %arg1[%c1_72, %c6_73] : memref<2x8xi32, #tpu.memory_space<smem>>
      %c14_i32 = arith.constant 14 : i32
      %c0_i32_74 = arith.constant 0 : i32
      %81 = tpu.memref_slice %arg2[%80, %c0_i32_74] : memref<256x128xf32, #tpu.memory_space<any>> -> memref<1x128xf32, #tpu.memory_space<any>>
      %c14_i32_75 = arith.constant 14 : i32
      %c0_i32_76 = arith.constant 0 : i32
      %82 = tpu.memref_slice %arg6[%c14_i32_75, %c0_i32_76] : memref<16x128xf32, #tpu.memory_space<vmem>> -> memref<1x128xf32, #tpu.memory_space<vmem>>
      %83 = tpu.memref_slice %arg8[%c14_i32] : memref<16x!tpu.dma_semaphore, #tpu.memory_space<semaphore_mem>> -> memref<1x!tpu.dma_semaphore, #tpu.memory_space<semaphore_mem>>
      %84 = tpu.memref_squeeze %83 : memref<1x!tpu.dma_semaphore, #tpu.memory_space<semaphore_mem>> -> memref<!tpu.dma_semaphore, #tpu.memory_space<semaphore_mem>>
      tpu.enqueue_dma source(%81 : memref<1x128xf32, #tpu.memory_space<any>>) target(%82 : memref<1x128xf32, #tpu.memory_space<vmem>>) target_semaphore(%84 : memref<!tpu.dma_semaphore, #tpu.memory_space<semaphore_mem>>)
      %c1_77 = arith.constant 1 : index
      %c7_78 = arith.constant 7 : index
      %85 = memref.load %arg1[%c1_77, %c7_78] : memref<2x8xi32, #tpu.memory_space<smem>>
      %c15_i32 = arith.constant 15 : i32
      %c0_i32_79 = arith.constant 0 : i32
      %86 = tpu.memref_slice %arg2[%85, %c0_i32_79] : memref<256x128xf32, #tpu.memory_space<any>> -> memref<1x128xf32, #tpu.memory_space<any>>
      %c15_i32_80 = arith.constant 15 : i32
      %c0_i32_81 = arith.constant 0 : i32
      %87 = tpu.memref_slice %arg6[%c15_i32_80, %c0_i32_81] : memref<16x128xf32, #tpu.memory_space<vmem>> -> memref<1x128xf32, #tpu.memory_space<vmem>>
      %88 = tpu.memref_slice %arg8[%c15_i32] : memref<16x!tpu.dma_semaphore, #tpu.memory_space<semaphore_mem>> -> memref<1x!tpu.dma_semaphore, #tpu.memory_space<semaphore_mem>>
      %89 = tpu.memref_squeeze %88 : memref<1x!tpu.dma_semaphore, #tpu.memory_space<semaphore_mem>> -> memref<!tpu.dma_semaphore, #tpu.memory_space<semaphore_mem>>
      tpu.enqueue_dma source(%86 : memref<1x128xf32, #tpu.memory_space<any>>) target(%87 : memref<1x128xf32, #tpu.memory_space<vmem>>) target_semaphore(%89 : memref<!tpu.dma_semaphore, #tpu.memory_space<semaphore_mem>>)
      %c0_i32_82 = arith.constant 0 : i32
      %c0_i32_83 = arith.constant 0 : i32
      %90 = tpu.memref_slice %arg2[%10, %c0_i32_83] : memref<256x128xf32, #tpu.memory_space<any>> -> memref<1x128xf32, #tpu.memory_space<any>>
      %c0_i32_84 = arith.constant 0 : i32
      %c0_i32_85 = arith.constant 0 : i32
      %91 = tpu.memref_slice %arg6[%c0_i32_84, %c0_i32_85] : memref<16x128xf32, #tpu.memory_space<vmem>> -> memref<1x128xf32, #tpu.memory_space<vmem>>
      %92 = tpu.memref_slice %arg8[%c0_i32_82] : memref<16x!tpu.dma_semaphore, #tpu.memory_space<semaphore_mem>> -> memref<1x!tpu.dma_semaphore, #tpu.memory_space<semaphore_mem>>
      %93 = tpu.memref_squeeze %92 : memref<1x!tpu.dma_semaphore, #tpu.memory_space<semaphore_mem>> -> memref<!tpu.dma_semaphore, #tpu.memory_space<semaphore_mem>>
      tpu.wait_dma2 semaphore(%93 : memref<!tpu.dma_semaphore, #tpu.memory_space<semaphore_mem>>) src(%90 : memref<1x128xf32, #tpu.memory_space<any>>) dst(%91 : memref<1x128xf32, #tpu.memory_space<vmem>>)
      %c1_i32_86 = arith.constant 1 : i32
      %c0_i32_87 = arith.constant 0 : i32
      %94 = tpu.memref_slice %arg2[%15, %c0_i32_87] : memref<256x128xf32, #tpu.memory_space<any>> -> memref<1x128xf32, #tpu.memory_space<any>>
      %c1_i32_88 = arith.constant 1 : i32
      %c0_i32_89 = arith.constant 0 : i32
      %95 = tpu.memref_slice %arg6[%c1_i32_88, %c0_i32_89] : memref<16x128xf32, #tpu.memory_space<vmem>> -> memref<1x128xf32, #tpu.memory_space<vmem>>
      %96 = tpu.memref_slice %arg8[%c1_i32_86] : memref<16x!tpu.dma_semaphore, #tpu.memory_space<semaphore_mem>> -> memref<1x!tpu.dma_semaphore, #tpu.memory_space<semaphore_mem>>
      %97 = tpu.memref_squeeze %96 : memref<1x!tpu.dma_semaphore, #tpu.memory_space<semaphore_mem>> -> memref<!tpu.dma_semaphore, #tpu.memory_space<semaphore_mem>>
      tpu.wait_dma2 semaphore(%97 : memref<!tpu.dma_semaphore, #tpu.memory_space<semaphore_mem>>) src(%94 : memref<1x128xf32, #tpu.memory_space<any>>) dst(%95 : memref<1x128xf32, #tpu.memory_space<vmem>>)
      %c2_i32_90 = arith.constant 2 : i32
      %c0_i32_91 = arith.constant 0 : i32
      %98 = tpu.memref_slice %arg2[%20, %c0_i32_91] : memref<256x128xf32, #tpu.memory_space<any>> -> memref<1x128xf32, #tpu.memory_space<any>>
      %c2_i32_92 = arith.constant 2 : i32
      %c0_i32_93 = arith.constant 0 : i32
      %99 = tpu.memref_slice %arg6[%c2_i32_92, %c0_i32_93] : memref<16x128xf32, #tpu.memory_space<vmem>> -> memref<1x128xf32, #tpu.memory_space<vmem>>
      %100 = tpu.memref_slice %arg8[%c2_i32_90] : memref<16x!tpu.dma_semaphore, #tpu.memory_space<semaphore_mem>> -> memref<1x!tpu.dma_semaphore, #tpu.memory_space<semaphore_mem>>
      %101 = tpu.memref_squeeze %100 : memref<1x!tpu.dma_semaphore, #tpu.memory_space<semaphore_mem>> -> memref<!tpu.dma_semaphore, #tpu.memory_space<semaphore_mem>>
      tpu.wait_dma2 semaphore(%101 : memref<!tpu.dma_semaphore, #tpu.memory_space<semaphore_mem>>) src(%98 : memref<1x128xf32, #tpu.memory_space<any>>) dst(%99 : memref<1x128xf32, #tpu.memory_space<vmem>>)
      %c3_i32_94 = arith.constant 3 : i32
      %c0_i32_95 = arith.constant 0 : i32
      %102 = tpu.memref_slice %arg2[%25, %c0_i32_95] : memref<256x128xf32, #tpu.memory_space<any>> -> memref<1x128xf32, #tpu.memory_space<any>>
      %c3_i32_96 = arith.constant 3 : i32
      %c0_i32_97 = arith.constant 0 : i32
      %103 = tpu.memref_slice %arg6[%c3_i32_96, %c0_i32_97] : memref<16x128xf32, #tpu.memory_space<vmem>> -> memref<1x128xf32, #tpu.memory_space<vmem>>
      %104 = tpu.memref_slice %arg8[%c3_i32_94] : memref<16x!tpu.dma_semaphore, #tpu.memory_space<semaphore_mem>> -> memref<1x!tpu.dma_semaphore, #tpu.memory_space<semaphore_mem>>
      %105 = tpu.memref_squeeze %104 : memref<1x!tpu.dma_semaphore, #tpu.memory_space<semaphore_mem>> -> memref<!tpu.dma_semaphore, #tpu.memory_space<semaphore_mem>>
      tpu.wait_dma2 semaphore(%105 : memref<!tpu.dma_semaphore, #tpu.memory_space<semaphore_mem>>) src(%102 : memref<1x128xf32, #tpu.memory_space<any>>) dst(%103 : memref<1x128xf32, #tpu.memory_space<vmem>>)
      %c4_i32_98 = arith.constant 4 : i32
      %c0_i32_99 = arith.constant 0 : i32
      %106 = tpu.memref_slice %arg2[%30, %c0_i32_99] : memref<256x128xf32, #tpu.memory_space<any>> -> memref<1x128xf32, #tpu.memory_space<any>>
      %c4_i32_100 = arith.constant 4 : i32
      %c0_i32_101 = arith.constant 0 : i32
      %107 = tpu.memref_slice %arg6[%c4_i32_100, %c0_i32_101] : memref<16x128xf32, #tpu.memory_space<vmem>> -> memref<1x128xf32, #tpu.memory_space<vmem>>
      %108 = tpu.memref_slice %arg8[%c4_i32_98] : memref<16x!tpu.dma_semaphore, #tpu.memory_space<semaphore_mem>> -> memref<1x!tpu.dma_semaphore, #tpu.memory_space<semaphore_mem>>
      %109 = tpu.memref_squeeze %108 : memref<1x!tpu.dma_semaphore, #tpu.memory_space<semaphore_mem>> -> memref<!tpu.dma_semaphore, #tpu.memory_space<semaphore_mem>>
      tpu.wait_dma2 semaphore(%109 : memref<!tpu.dma_semaphore, #tpu.memory_space<semaphore_mem>>) src(%106 : memref<1x128xf32, #tpu.memory_space<any>>) dst(%107 : memref<1x128xf32, #tpu.memory_space<vmem>>)
      %c5_i32_102 = arith.constant 5 : i32
      %c0_i32_103 = arith.constant 0 : i32
      %110 = tpu.memref_slice %arg2[%35, %c0_i32_103] : memref<256x128xf32, #tpu.memory_space<any>> -> memref<1x128xf32, #tpu.memory_space<any>>
      %c5_i32_104 = arith.constant 5 : i32
      %c0_i32_105 = arith.constant 0 : i32
      %111 = tpu.memref_slice %arg6[%c5_i32_104, %c0_i32_105] : memref<16x128xf32, #tpu.memory_space<vmem>> -> memref<1x128xf32, #tpu.memory_space<vmem>>
      %112 = tpu.memref_slice %arg8[%c5_i32_102] : memref<16x!tpu.dma_semaphore, #tpu.memory_space<semaphore_mem>> -> memref<1x!tpu.dma_semaphore, #tpu.memory_space<semaphore_mem>>
      %113 = tpu.memref_squeeze %112 : memref<1x!tpu.dma_semaphore, #tpu.memory_space<semaphore_mem>> -> memref<!tpu.dma_semaphore, #tpu.memory_space<semaphore_mem>>
      tpu.wait_dma2 semaphore(%113 : memref<!tpu.dma_semaphore, #tpu.memory_space<semaphore_mem>>) src(%110 : memref<1x128xf32, #tpu.memory_space<any>>) dst(%111 : memref<1x128xf32, #tpu.memory_space<vmem>>)
      %c6_i32_106 = arith.constant 6 : i32
      %c0_i32_107 = arith.constant 0 : i32
      %114 = tpu.memref_slice %arg2[%40, %c0_i32_107] : memref<256x128xf32, #tpu.memory_space<any>> -> memref<1x128xf32, #tpu.memory_space<any>>
      %c6_i32_108 = arith.constant 6 : i32
      %c0_i32_109 = arith.constant 0 : i32
      %115 = tpu.memref_slice %arg6[%c6_i32_108, %c0_i32_109] : memref<16x128xf32, #tpu.memory_space<vmem>> -> memref<1x128xf32, #tpu.memory_space<vmem>>
      %116 = tpu.memref_slice %arg8[%c6_i32_106] : memref<16x!tpu.dma_semaphore, #tpu.memory_space<semaphore_mem>> -> memref<1x!tpu.dma_semaphore, #tpu.memory_space<semaphore_mem>>
      %117 = tpu.memref_squeeze %116 : memref<1x!tpu.dma_semaphore, #tpu.memory_space<semaphore_mem>> -> memref<!tpu.dma_semaphore, #tpu.memory_space<semaphore_mem>>
      tpu.wait_dma2 semaphore(%117 : memref<!tpu.dma_semaphore, #tpu.memory_space<semaphore_mem>>) src(%114 : memref<1x128xf32, #tpu.memory_space<any>>) dst(%115 : memref<1x128xf32, #tpu.memory_space<vmem>>)
      %c7_i32_110 = arith.constant 7 : i32
      %c0_i32_111 = arith.constant 0 : i32
      %118 = tpu.memref_slice %arg2[%45, %c0_i32_111] : memref<256x128xf32, #tpu.memory_space<any>> -> memref<1x128xf32, #tpu.memory_space<any>>
      %c7_i32_112 = arith.constant 7 : i32
      %c0_i32_113 = arith.constant 0 : i32
      %119 = tpu.memref_slice %arg6[%c7_i32_112, %c0_i32_113] : memref<16x128xf32, #tpu.memory_space<vmem>> -> memref<1x128xf32, #tpu.memory_space<vmem>>
      %120 = tpu.memref_slice %arg8[%c7_i32_110] : memref<16x!tpu.dma_semaphore, #tpu.memory_space<semaphore_mem>> -> memref<1x!tpu.dma_semaphore, #tpu.memory_space<semaphore_mem>>
      %121 = tpu.memref_squeeze %120 : memref<1x!tpu.dma_semaphore, #tpu.memory_space<semaphore_mem>> -> memref<!tpu.dma_semaphore, #tpu.memory_space<semaphore_mem>>
      tpu.wait_dma2 semaphore(%121 : memref<!tpu.dma_semaphore, #tpu.memory_space<semaphore_mem>>) src(%118 : memref<1x128xf32, #tpu.memory_space<any>>) dst(%119 : memref<1x128xf32, #tpu.memory_space<vmem>>)
      %c8_i32_114 = arith.constant 8 : i32
      %c0_i32_115 = arith.constant 0 : i32
      %122 = tpu.memref_slice %arg2[%50, %c0_i32_115] : memref<256x128xf32, #tpu.memory_space<any>> -> memref<1x128xf32, #tpu.memory_space<any>>
      %c8_i32_116 = arith.constant 8 : i32
      %c0_i32_117 = arith.constant 0 : i32
      %123 = tpu.memref_slice %arg6[%c8_i32_116, %c0_i32_117] : memref<16x128xf32, #tpu.memory_space<vmem>> -> memref<1x128xf32, #tpu.memory_space<vmem>>
      %124 = tpu.memref_slice %arg8[%c8_i32_114] : memref<16x!tpu.dma_semaphore, #tpu.memory_space<semaphore_mem>> -> memref<1x!tpu.dma_semaphore, #tpu.memory_space<semaphore_mem>>
      %125 = tpu.memref_squeeze %124 : memref<1x!tpu.dma_semaphore, #tpu.memory_space<semaphore_mem>> -> memref<!tpu.dma_semaphore, #tpu.memory_space<semaphore_mem>>
      tpu.wait_dma2 semaphore(%125 : memref<!tpu.dma_semaphore, #tpu.memory_space<semaphore_mem>>) src(%122 : memref<1x128xf32, #tpu.memory_space<any>>) dst(%123 : memref<1x128xf32, #tpu.memory_space<vmem>>)
      %c9_i32_118 = arith.constant 9 : i32
      %c0_i32_119 = arith.constant 0 : i32
      %126 = tpu.memref_slice %arg2[%55, %c0_i32_119] : memref<256x128xf32, #tpu.memory_space<any>> -> memref<1x128xf32, #tpu.memory_space<any>>
      %c9_i32_120 = arith.constant 9 : i32
      %c0_i32_121 = arith.constant 0 : i32
      %127 = tpu.memref_slice %arg6[%c9_i32_120, %c0_i32_121] : memref<16x128xf32, #tpu.memory_space<vmem>> -> memref<1x128xf32, #tpu.memory_space<vmem>>
      %128 = tpu.memref_slice %arg8[%c9_i32_118] : memref<16x!tpu.dma_semaphore, #tpu.memory_space<semaphore_mem>> -> memref<1x!tpu.dma_semaphore, #tpu.memory_space<semaphore_mem>>
      %129 = tpu.memref_squeeze %128 : memref<1x!tpu.dma_semaphore, #tpu.memory_space<semaphore_mem>> -> memref<!tpu.dma_semaphore, #tpu.memory_space<semaphore_mem>>
      tpu.wait_dma2 semaphore(%129 : memref<!tpu.dma_semaphore, #tpu.memory_space<semaphore_mem>>) src(%126 : memref<1x128xf32, #tpu.memory_space<any>>) dst(%127 : memref<1x128xf32, #tpu.memory_space<vmem>>)
      %c10_i32_122 = arith.constant 10 : i32
      %c0_i32_123 = arith.constant 0 : i32
      %130 = tpu.memref_slice %arg2[%60, %c0_i32_123] : memref<256x128xf32, #tpu.memory_space<any>> -> memref<1x128xf32, #tpu.memory_space<any>>
      %c10_i32_124 = arith.constant 10 : i32
      %c0_i32_125 = arith.constant 0 : i32
      %131 = tpu.memref_slice %arg6[%c10_i32_124, %c0_i32_125] : memref<16x128xf32, #tpu.memory_space<vmem>> -> memref<1x128xf32, #tpu.memory_space<vmem>>
      %132 = tpu.memref_slice %arg8[%c10_i32_122] : memref<16x!tpu.dma_semaphore, #tpu.memory_space<semaphore_mem>> -> memref<1x!tpu.dma_semaphore, #tpu.memory_space<semaphore_mem>>
      %133 = tpu.memref_squeeze %132 : memref<1x!tpu.dma_semaphore, #tpu.memory_space<semaphore_mem>> -> memref<!tpu.dma_semaphore, #tpu.memory_space<semaphore_mem>>
      tpu.wait_dma2 semaphore(%133 : memref<!tpu.dma_semaphore, #tpu.memory_space<semaphore_mem>>) src(%130 : memref<1x128xf32, #tpu.memory_space<any>>) dst(%131 : memref<1x128xf32, #tpu.memory_space<vmem>>)
      %c11_i32_126 = arith.constant 11 : i32
      %c0_i32_127 = arith.constant 0 : i32
      %134 = tpu.memref_slice %arg2[%65, %c0_i32_127] : memref<256x128xf32, #tpu.memory_space<any>> -> memref<1x128xf32, #tpu.memory_space<any>>
      %c11_i32_128 = arith.constant 11 : i32
      %c0_i32_129 = arith.constant 0 : i32
      %135 = tpu.memref_slice %arg6[%c11_i32_128, %c0_i32_129] : memref<16x128xf32, #tpu.memory_space<vmem>> -> memref<1x128xf32, #tpu.memory_space<vmem>>
      %136 = tpu.memref_slice %arg8[%c11_i32_126] : memref<16x!tpu.dma_semaphore, #tpu.memory_space<semaphore_mem>> -> memref<1x!tpu.dma_semaphore, #tpu.memory_space<semaphore_mem>>
      %137 = tpu.memref_squeeze %136 : memref<1x!tpu.dma_semaphore, #tpu.memory_space<semaphore_mem>> -> memref<!tpu.dma_semaphore, #tpu.memory_space<semaphore_mem>>
      tpu.wait_dma2 semaphore(%137 : memref<!tpu.dma_semaphore, #tpu.memory_space<semaphore_mem>>) src(%134 : memref<1x128xf32, #tpu.memory_space<any>>) dst(%135 : memref<1x128xf32, #tpu.memory_space<vmem>>)
      %c12_i32_130 = arith.constant 12 : i32
      %c0_i32_131 = arith.constant 0 : i32
      %138 = tpu.memref_slice %arg2[%70, %c0_i32_131] : memref<256x128xf32, #tpu.memory_space<any>> -> memref<1x128xf32, #tpu.memory_space<any>>
      %c12_i32_132 = arith.constant 12 : i32
      %c0_i32_133 = arith.constant 0 : i32
      %139 = tpu.memref_slice %arg6[%c12_i32_132, %c0_i32_133] : memref<16x128xf32, #tpu.memory_space<vmem>> -> memref<1x128xf32, #tpu.memory_space<vmem>>
      %140 = tpu.memref_slice %arg8[%c12_i32_130] : memref<16x!tpu.dma_semaphore, #tpu.memory_space<semaphore_mem>> -> memref<1x!tpu.dma_semaphore, #tpu.memory_space<semaphore_mem>>
      %141 = tpu.memref_squeeze %140 : memref<1x!tpu.dma_semaphore, #tpu.memory_space<semaphore_mem>> -> memref<!tpu.dma_semaphore, #tpu.memory_space<semaphore_mem>>
      tpu.wait_dma2 semaphore(%141 : memref<!tpu.dma_semaphore, #tpu.memory_space<semaphore_mem>>) src(%138 : memref<1x128xf32, #tpu.memory_space<any>>) dst(%139 : memref<1x128xf32, #tpu.memory_space<vmem>>)
      %c13_i32_134 = arith.constant 13 : i32
      %c0_i32_135 = arith.constant 0 : i32
      %142 = tpu.memref_slice %arg2[%75, %c0_i32_135] : memref<256x128xf32, #tpu.memory_space<any>> -> memref<1x128xf32, #tpu.memory_space<any>>
      %c13_i32_136 = arith.constant 13 : i32
      %c0_i32_137 = arith.constant 0 : i32
      %143 = tpu.memref_slice %arg6[%c13_i32_136, %c0_i32_137] : memref<16x128xf32, #tpu.memory_space<vmem>> -> memref<1x128xf32, #tpu.memory_space<vmem>>
      %144 = tpu.memref_slice %arg8[%c13_i32_134] : memref<16x!tpu.dma_semaphore, #tpu.memory_space<semaphore_mem>> -> memref<1x!tpu.dma_semaphore, #tpu.memory_space<semaphore_mem>>
      %145 = tpu.memref_squeeze %144 : memref<1x!tpu.dma_semaphore, #tpu.memory_space<semaphore_mem>> -> memref<!tpu.dma_semaphore, #tpu.memory_space<semaphore_mem>>
      tpu.wait_dma2 semaphore(%145 : memref<!tpu.dma_semaphore, #tpu.memory_space<semaphore_mem>>) src(%142 : memref<1x128xf32, #tpu.memory_space<any>>) dst(%143 : memref<1x128xf32, #tpu.memory_space<vmem>>)
      %c14_i32_138 = arith.constant 14 : i32
      %c0_i32_139 = arith.constant 0 : i32
      %146 = tpu.memref_slice %arg2[%80, %c0_i32_139] : memref<256x128xf32, #tpu.memory_space<any>> -> memref<1x128xf32, #tpu.memory_space<any>>
      %c14_i32_140 = arith.constant 14 : i32
      %c0_i32_141 = arith.constant 0 : i32
      %147 = tpu.memref_slice %arg6[%c14_i32_140, %c0_i32_141] : memref<16x128xf32, #tpu.memory_space<vmem>> -> memref<1x128xf32, #tpu.memory_space<vmem>>
      %148 = tpu.memref_slice %arg8[%c14_i32_138] : memref<16x!tpu.dma_semaphore, #tpu.memory_space<semaphore_mem>> -> memref<1x!tpu.dma_semaphore, #tpu.memory_space<semaphore_mem>>
      %149 = tpu.memref_squeeze %148 : memref<1x!tpu.dma_semaphore, #tpu.memory_space<semaphore_mem>> -> memref<!tpu.dma_semaphore, #tpu.memory_space<semaphore_mem>>
      tpu.wait_dma2 semaphore(%149 : memref<!tpu.dma_semaphore, #tpu.memory_space<semaphore_mem>>) src(%146 : memref<1x128xf32, #tpu.memory_space<any>>) dst(%147 : memref<1x128xf32, #tpu.memory_space<vmem>>)
      %c15_i32_142 = arith.constant 15 : i32
      %c0_i32_143 = arith.constant 0 : i32
      %150 = tpu.memref_slice %arg2[%85, %c0_i32_143] : memref<256x128xf32, #tpu.memory_space<any>> -> memref<1x128xf32, #tpu.memory_space<any>>
      %c15_i32_144 = arith.constant 15 : i32
      %c0_i32_145 = arith.constant 0 : i32
      %151 = tpu.memref_slice %arg6[%c15_i32_144, %c0_i32_145] : memref<16x128xf32, #tpu.memory_space<vmem>> -> memref<1x128xf32, #tpu.memory_space<vmem>>
      %152 = tpu.memref_slice %arg8[%c15_i32_142] : memref<16x!tpu.dma_semaphore, #tpu.memory_space<semaphore_mem>> -> memref<1x!tpu.dma_semaphore, #tpu.memory_space<semaphore_mem>>
      %153 = tpu.memref_squeeze %152 : memref<1x!tpu.dma_semaphore, #tpu.memory_space<semaphore_mem>> -> memref<!tpu.dma_semaphore, #tpu.memory_space<semaphore_mem>>
      tpu.wait_dma2 semaphore(%153 : memref<!tpu.dma_semaphore, #tpu.memory_space<semaphore_mem>>) src(%150 : memref<1x128xf32, #tpu.memory_space<any>>) dst(%151 : memref<1x128xf32, #tpu.memory_space<vmem>>)
      %c0_146 = arith.constant 0 : index
      %c0_147 = arith.constant 0 : index
      %154 = vector.load %arg6[%c0_146, %c0_147] : memref<16x128xf32, #tpu.memory_space<vmem>>, vector<16x128xf32>
      %155 = arith.mulf %154, %154 : vector<16x128xf32>
      %cst_148 = arith.constant dense<0.000000e+00> : vector<16xf32>
      %156 = vector.multi_reduction <add>, %155, %cst_148 [1] : vector<16x128xf32> to vector<16xf32>
      %157 = vector.shape_cast %156 : vector<16xf32> to vector<16x1xf32>
      %cst_149 = arith.constant 2.500000e+01 : f32
      %158 = vector.broadcast %cst_149 : f32 to vector<16x1xf32>
      %159 = arith.cmpf ogt, %157, %158 : vector<16x1xf32>
      %cst_150 = arith.constant 9.99999996E-13 : f32
      %160 = vector.broadcast %cst_150 : f32 to vector<16x1xf32>
      %161 = arith.maximumf %157, %160 : vector<16x1xf32>
      %162 = math.rsqrt %161 : vector<16x1xf32>
      %cst_151 = arith.constant 5.000000e+00 : f32
      %163 = vector.broadcast %cst_151 : f32 to vector<16x1xf32>
      %164 = arith.mulf %163, %162 : vector<16x1xf32>
      %cst_152 = arith.constant 1.000000e+00 : f32
      %165 = vector.broadcast %cst_152 : f32 to vector<16x1xf32>
      %166 = arith.select %159, %164, %165 : vector<16x1xi1>, vector<16x1xf32>
      %167 = vector.broadcast %166 : vector<16x1xf32> to vector<16x128xf32>
      %168 = arith.mulf %154, %167 : vector<16x128xf32>
      %169 = vector.shape_cast %168 : vector<16x128xf32> to vector<2x8x128xf32>
      %cst_153 = arith.constant dense<0.000000e+00> : vector<2x128xf32>
      %170 = vector.multi_reduction <add>, %169, %cst_153 [1] : vector<2x8x128xf32> to vector<2x128xf32>
      %cst_154 = arith.constant 8.000000e+00 : f32
      %171 = vector.broadcast %cst_154 : f32 to vector<2x128xf32>
      %172 = arith.divf %170, %171 : vector<2x128xf32>
      %c0_155 = arith.constant 0 : index
      %c0_156 = arith.constant 0 : index
      %173 = vector.load %arg7[%c0_155, %c0_156] : memref<2x128xf32, #tpu.memory_space<vmem>>, vector<2x128xf32>
      tpu.vector_store %arg7[%c0_155, %c0_156], %172 {strides = array<i32>} : memref<2x128xf32, #tpu.memory_space<vmem>>, vector<2x128xf32>,
    } else {
    }
    %c0 = arith.constant 0 : index
    %c0_1 = arith.constant 0 : index
    %3 = vector.load %arg7[%c0, %c0_1] : memref<2x128xf32, #tpu.memory_space<vmem>>, vector<2x128xf32>
    %c0_2 = arith.constant 0 : index
    %c0_3 = arith.constant 0 : index
    %4 = vector.load %arg3[%c0_2, %c0_3] : memref<128x128xf32, #tpu.memory_space<vmem>>, vector<128x128xf32>
    %cst = arith.constant dense<0.000000e+00> : vector<2x128xf32>
    %5 = tpu.matmul %3, %4, %cst {dimension_numbers = #tpu.dot_dimension_numbers<[1], [0], [0], [1], [0, 0, 1, 1], [], []>} : vector<2x128xf32>, vector<128x128xf32>, vector<2x128xf32> -> vector<2x128xf32>
    %c0_4 = arith.constant 0 : index
    %c0_5 = arith.constant 0 : index
    %6 = vector.load %arg4[%c0_4, %c0_5] : memref<1x128xf32, #tpu.memory_space<vmem>>, vector<1x128xf32>
    %7 = vector.broadcast %6 : vector<1x128xf32> to vector<2x128xf32>
    %8 = arith.addf %5, %7 : vector<2x128xf32>
    %c0_6 = arith.constant 0 : index
    %c0_7 = arith.constant 0 : index
    %9 = vector.load %arg5[%c0_6, %c0_7] : memref<2x128xf32, #tpu.memory_space<vmem>>, vector<2x128xf32>
    tpu.vector_store %arg5[%c0_6, %c0_7], %8 {strides = array<i32>} : memref<2x128xf32, #tpu.memory_space<vmem>>, vector<2x128xf32>,
    return
  }
  func.func @transform_1(%arg0: i32, %arg1: memref<2x8xi32, #tpu.memory_space<smem>>) -> (i32, i32) {
    %c0_i32 = arith.constant 0 : i32
    %c0_i32_0 = arith.constant 0 : i32
    return %c0_i32, %arg0 : i32, i32
  }
  func.func @transform_2(%arg0: i32, %arg1: memref<2x8xi32, #tpu.memory_space<smem>>) -> (i32, i32) {
    %c0_i32 = arith.constant 0 : i32
    %c0_i32_0 = arith.constant 0 : i32
    return %c0_i32, %arg0 : i32, i32
  }
  func.func @transform_3(%arg0: i32, %arg1: memref<2x8xi32, #tpu.memory_space<smem>>) -> (i32, i32) {
    %c0_i32 = arith.constant 0 : i32
    %c0_i32_0 = arith.constant 0 : i32
    return %c0_i32, %arg0 : i32, i32
  }
}

</mosaic_0001>

<bundles_post_ra>
// kernel: tpu_custom_call.1
= control target key start
LH: loop header
LB: loop body
LE: loop exit
PB: predicated region body
PF: predicated region fallthrough
CT: control target
= control target key end

     0   :  { %s1469_s18 = smov [#allocation6]   ;;  %s1851_s0 = inlined_call_operand.hbm [shape: s32[2,8], index: 0, kind: input, shape index: {}]   ;;  %s1852_s1 = inlined_call_operand.hbm [shape: f32[256,128], index: 1, kind: input, shape index: {}]   ;;  %s1853_s2 = inlined_call_operand.hbm [shape: f32[128,256], index: 2, kind: input, shape index: {}]   ;;  %s1854_s3 = inlined_call_operand.vmem [shape: f32[1,256], index: 3, kind: input, shape index: {}]   ;;  %s1855_s4 = inlined_call_operand.hbm [shape: f32[2,256], index: 4, kind: output, shape index: {}]  }
   0x1   :  { %1862 = sst [smem:[#allocation70_spill]] %s1853_s2  ;;  %s10_s17 = sshll.u32 %s1851_s0, 4  ;;  %s11_s17 = int_to_ptr.hbm [resolvable:$true] %s10_s17 }
   0x2   :  { %13 = dma.hbm_to_smem %s11_s17, 32, %s1469_s18, [#allocation5] }
   0x3   :  { %1411 = dma.done.wait [#allocation5], 32 }
   0x4   :  { %1412 = vsyncadd [#allocation5], 4294967264 }
   0x5   :  { %16 = sfence }
   0x6   :  { %17 = vsyncpa [#allocation8], 0 }
   0x7   :  { %19 = vsyncpa [#allocation8 + $0x1], 0 }
   0x8   :  { %20 = vsyncpa [#allocation9], 0 }
   0x9   :  { %22 = vsyncpa [#allocation9 + $0x1], 0  ;;  %s1518_s19 = smov 0   ;;  %s1520_s20 = smov 0  }
   0xa   :  { %s1522_s21 = smov 0   ;;  %s1524_s22 = smov 0  }
   0xb LB: > { %1863 = sst [smem:[#allocation64_spill]] %s1459_s20  ;;  %s1539_s0 = sadd.s32 4294967295, %s1467_s22   ;;  %s1467_s22 = sphi %s1524_s22, %s1879_s22   ;;  %s1463_s21 = sphi %s1522_s21, %s1882_s21   ;;  %s1459_s20 = sphi %s1520_s20, %s1881_s20   ;;  %s1455_s19 = sphi %s1518_s19, %s1880_s19  }
   0xc   : > { %1864 = sst [smem:[#allocation65_spill]] %s1463_s21  ;;  %s823_s23 = sadd.s32 4294967294, %s1467_s22  }
   0xd   : > { %1865 = sst [smem:[#allocation66_spill]] %s1467_s22  ;;  %s1543_s24 = sadd.s32 1, %s1467_s22  }
   0xe   : > { %1866 = sst [smem:[#allocation67_spill]] %s1543_s24  ;;  %s35_s25 = sadd.s32 1, %s1463_s21 }
   0xf   : > { %s32_s26 = ssub.s32 %s1467_s22, %s1543_s24  ;;  %p42_p0 = scmp.ne.s32.totalorder %s1463_s21, %s1459_s20 }
  0x10   : > { %p33_p1 = scmp.eq.s32.totalorder %s32_s26, 0  ;;  %p43_p2 = scmp.eq.s32.totalorder %s1467_s22, 0 }
  0x11   : > { %p48_p3 = scmp.ne.s32.totalorder %s1459_s20, %s1455_s19  ;;  %p49_p4 = scmp.eq.s32.totalorder %s1539_s0, 0 }
  0x12   : > { %s1555_s27 = scalar_select %p33_p1, %s1463_s21, %s35_s25  }
  0x13   : > { %p1557_p5 = por %p43_p2, %p42_p0  ;;  %p1561_p6 = por %p49_p4, %p48_p3 }
  0x14   : > { %1867 = sst [smem:[#allocation68_spill]] %s1555_s27  ;;  %p98_p7 = scmp.eq.s32.totalorder %s1539_s0, 1 }
  0x15   : > { %p104_p8 = scmp.eq.s32.totalorder %s823_s23, 1  ;;  %p825_p9 = scmp.ge.s32.totalorder %s1467_s22, 2 }
  0x16   : > { %p879_p10 = scmp.lt.s32.totalorder %s1467_s22, 2  ;;  %p1568_p11 = por %p98_p7, %p42_p0 }
  0x17   : > { %p1572_p12 = por %p104_p8, %p48_p3  ;;  %s124_s6 = sand.u32 1, %s1463_s21  }
  0x18   : > { %s827_s7 = sshll.u32 %s1467_s22, 3  ;;  %s826_s8 = sshll.u32 %s124_s6, 7 }
  0x19   : > { %s1872_s2 = sld [smem:[#allocation70_spill]]  ;;  %s128_s13 = scalar_lea.vmem [#allocation7], %s826_s8 }
  0x1a   : > { %s135_s14 = sshll.u32 %s128_s13, 4  ;;  %p1583_p13 = pnand %p879_p10, %p1557_p5  ;;  %s136_s14 = int_to_ptr.vmem [resolvable:$true] %s135_s14 }
  0x1b   : > { %p828_p0 = scmp.ge.s32.totalorder %s1467_s22, 1  ;;  %s125_s16 = scalar_lea.sflag [#allocation8], %s124_s6 }
  0x1c   : > { %p957_p2 = pneg %p1583_p13 }
  0x1f   : > { %s132_s11 = scalar_lea.hbm %s1872_s2, %s827_s7  ;;  %s960_s26 = scalar_lea.hbm %s1872_s2, 256 }
  0x20   : > { %s133_s12 = sshll.u32 %s132_s11, 4  ;;  %s134_s12 = int_to_ptr.hbm [resolvable:$true] %s133_s12 }
  0x21   : > { %s953_s17 = sshra.s32 %s134_s12, 4  ;;  %s954_s17 = int_to_ptr.hbm [resolvable:$true] %s953_s17 }
  0x22   : > { %s955_s18 = scalar_lea.hbm %s954_s17, 128  ;;  %p961_p5 = scmp.lt.s32.totalorder %s954_s17, %s1872_s2 }
  0x23   : > { %p956_p1 = scmp.ne.s32.totalorder %s954_s17, %s955_s18  ;;  %p962_p7 = scmp.lt.s32.totalorder %s960_s26, %s955_s18 }
  0x25   : > { %p958_p3 = pnand %p957_p2, %p956_p1  ;;  %p963_p8 = por %p962_p7, %p961_p5 }
  0x27   : > { %p959_p4 = pneg %p958_p3 }
  0x29   : > { %p964_p10 = pnand %p963_p8, %p959_p4 }
  0x2b   : > { %967 = shalt.err (!%p964_p10)
}
  0x2c   : > { %s1470_s6 = smov 256   ;;  %s1471_s8 = smov 128  }
  0x2d   : > { %s1472_s9 = smov 8   ;;  %p149_p1 = scmp.lt.s32.totalorder %s1467_s22, 3 }
  0x2e   : > { %874 = dma.hbm_to_vmem [thread:$0]  (!%p1583_p13), %s134_s12, 2048, %s136_s14, %s125_s16, %s1470_s6, %s1471_s8, %s1472_s9  }
  0x2f   : > { %p150_p2 = pnand %p828_p0, %p149_p1 }
  0x30   : > { %s1602_s10 = sand.u32 (!%p150_p2), 1, %s1459_s20  }
  0x31   : > { %153 = sbr.rel (%p150_p2) target bundleno = 625 (0x271), region = 28  ;;  %s829_s11 = sshll.u32 (!%p150_p2), %s1602_s10, 7 }
  0x32   : > { %s156_s13 = scalar_lea.sflag (!%p150_p2), [#allocation8], %s1602_s10  ;;  %s1606_s17 = scalar_lea.vmem (!%p150_p2), [#allocation7], %s829_s11 }
  0x36   : > { %1414 = dma.done.wait (%p1561_p6), %s156_s13, 2048  }
  0x37   : > { %1416 = vsyncadd (%p1561_p6), %s156_s13, 4294965248  ;;  %s830_s12 = sshll.u32 %s1602_s10, 1  ;;  %p184_p13 = scmp.lt.s32.totalorder %s1539_s0, 1 }
  0x38   : > { %s1621_s23 = scalar_lea.vmem [#allocation10], %s830_s12  ;;  %p831_p0 = scmp.ne.s32.totalorder %s1539_s0, 0 }
  0x39   : > { %s1615_s14 = scalar_select %p184_p13, %s1539_s0, 1 }
  0x3a   : > { %190 = sbr.rel (%p831_p0) target bundleno = 462 (0x1ce), region = 36 }
  0x3f   : > { %s191_s25 = sld [smem:[#allocation6]]  ;;  %s1473_s29 = smov [#allocation2]  }
  0x40   : > { %s202_s26 = sshll.u32 %s1473_s29, 4  ;;  %s832_s28 = sld [smem:[#allocation6 + $0x1]]  ;;  %s203_s26 = int_to_ptr.vmem [resolvable:$true] %s202_s26 }
  0x41   : > { %s1474_s7 = smov [#allocation2 + $0x1]   ;;  %s1626_s8 = sld [smem:[#allocation6 + $0x2]] }
  0x42   : > { %s1624_s6 = sshll.u32 %s1474_s7, 4  ;;  %s1475_s9 = smov [#allocation2 + $0x2]  }
  0x43   : > { %1874 = sst [smem:[#allocation69_spill]] %s1624_s6  ;;  %s1629_s11 = sshll.u32 %s1475_s9, 4  ;;  %s237_s11 = int_to_ptr.vmem [resolvable:$true] %s1629_s11 }
  0x44   : > { %s1631_s13 = sld [smem:[#allocation6 + $0x3]]  ;;  %s1643_s24 = scalar_lea.hbm %s1852_s1, 256 }
  0x45   : > { %s192_s16 = scalar_lea.hbm %s1852_s1, %s191_s25 }
  0x46   : > { %s200_s29 = sshll.u32 %s192_s16, 4  ;;  %s207_s7 = scalar_lea.hbm %s1852_s1, %s832_s28  ;;  %s201_s29 = int_to_ptr.hbm [resolvable:$true] %s200_s29 }
  0x47   : > { %s217_s27 = sshll.u32 %s207_s7, 4  ;;  %s983_s21 = sshra.s32 %s201_s29, 4  ;;  %s984_s21 = int_to_ptr.hbm [resolvable:$true] %s983_s21  ;;  %s218_s27 = int_to_ptr.hbm [resolvable:$true] %s217_s27 }
  0x48   : > { %s985_s6 = scalar_lea.hbm %s984_s21, 1  ;;  %p988_p3 = scmp.lt.s32.totalorder %s984_s21, %s1852_s1 }
  0x49   : > { %p986_p6 = scmp.ne.s32.totalorder %s984_s21, %s985_s6  ;;  %p989_p4 = scmp.lt.s32.totalorder %s1643_s24, %s985_s6 }
  0x4b   : > { %p990_p5 = por %p989_p4, %p988_p3 }
  0x4d   : > { %p991_p7 = pnand %p990_p5, %p986_p6 }
  0x4f   : > { %994 = shalt.err (!%p991_p7)  }
  0x50   : > { %205 = dma.hbm_to_vmem [thread:$0]  %s201_s29, 16, %s203_s26, [#allocation4] }
  0x51   : > { %s224_s25 = scalar_lea.hbm %s1852_s1, %s1626_s8  ;;  %s1007_s20 = sshra.s32 %s218_s27, 4  ;;  %s1008_s20 = int_to_ptr.hbm [resolvable:$true] %s1007_s20 }
  0x52   : > { %s1009_s28 = scalar_lea.hbm %s1008_s20, 1  ;;  %p1012_p10 = scmp.lt.s32.totalorder %s1008_s20, %s1852_s1 }
  0x53   : > { %p1010_p8 = scmp.ne.s32.totalorder %s1008_s20, %s1009_s28  ;;  %p1013_p1 = scmp.lt.s32.totalorder %s1643_s24, %s1009_s28 }
  0x55   : > { %p1014_p2 = por %p1013_p1, %p1012_p10 }
  0x57   : > { %p1015_p13 = pnand %p1014_p2, %p1010_p8 }
  0x59   : > { %1018 = shalt.err (!%p1015_p13)  }
  0x5a   : > { %s1875_s21 = sld [smem:[#allocation69_spill]]  ;;  %s234_s6 = sshll.u32 %s224_s25, 4  ;;  %s235_s6 = int_to_ptr.hbm [resolvable:$true] %s234_s6 }
  0x5b   : > { %s241_s29 = scalar_lea.hbm %s1852_s1, %s1631_s13  ;;  %s1031_s9 = sshra.s32 %s235_s6, 4  ;;  %s1032_s9 = int_to_ptr.hbm [resolvable:$true] %s1031_s9 }
  0x5c   : > { %s251_s7 = sshll.u32 %s241_s29, 4  ;;  %s1033_s12 = scalar_lea.hbm %s1032_s9, 1  ;;  %s252_s7 = int_to_ptr.hbm [resolvable:$true] %s251_s7 }
  0x5d   : > { %p1034_p0 = scmp.ne.s32.totalorder %s1032_s9, %s1033_s12  ;;  %p1036_p6 = scmp.lt.s32.totalorder %s1032_s9, %s1852_s1 }
  0x5e   : > { %p1037_p3 = scmp.lt.s32.totalorder %s1643_s24, %s1033_s12 }
  0x60   : > { %s1876_s26 = int_to_ptr.vmem [resolvable:$true] %s1875_s21  ;;  %p1038_p4 = por %p1037_p3, %p1036_p6 }
  0x61   : > { %222 = dma.hbm_to_vmem [thread:$0]  %s218_s27, 16, %s1876_s26, [#allocation4 + $0x1] }
  0x62   : > { %p1039_p5 = pnand %p1038_p4, %p1034_p0 }
  0x64   : > { %1042 = shalt.err (!%p1039_p5)  }
  0x65   : > { %239 = dma.hbm_to_vmem [thread:$0]  %s235_s6, 16, %s237_s11, [#allocation4 + $0x2] }
  0x66   : > { %s1476_s27 = smov [#allocation2 + $0x3]   ;;  %s835_s25 = sld [smem:[#allocation6 + $0x4]] }
  0x67   : > { %s253_s13 = sshll.u32 %s1476_s27, 4  ;;  %s1055_s20 = sshra.s32 %s252_s7, 4  ;;  %s254_s13 = int_to_ptr.vmem [resolvable:$true] %s253_s13  ;;  %s1056_s20 = int_to_ptr.hbm [resolvable:$true] %s1055_s20 }
  0x68   : > { %s1057_s28 = scalar_lea.hbm %s1056_s20, 1  ;;  %p1060_p8 = scmp.lt.s32.totalorder %s1056_s20, %s1852_s1 }
  0x69   : > { %p1058_p7 = scmp.ne.s32.totalorder %s1056_s20, %s1057_s28  ;;  %p1061_p10 = scmp.lt.s32.totalorder %s1643_s24, %s1057_s28 }
  0x6b   : > { %p1062_p1 = por %p1061_p10, %p1060_p8 }
  0x6d   : > { %p1063_p2 = pnand %p1062_p1, %p1058_p7 }
  0x6f   : > { %1066 = shalt.err (!%p1063_p2)  }
  0x70   : > { %256 = dma.hbm_to_vmem [thread:$0]  %s252_s7, 16, %s254_s13, [#allocation4 + $0x3] }
  0x71   : > { %s1477_s21 = smov [#allocation2 + $0x4]   ;;  %s836_s26 = sld [smem:[#allocation6 + $0x5]] }
  0x72   : > { %s270_s11 = sshll.u32 %s1477_s21, 4  ;;  %s1478_s6 = smov [#allocation2 + $0x5]   ;;  %s271_s11 = int_to_ptr.vmem [resolvable:$true] %s270_s11 }
  0x73   : > { %s1673_s16 = sshll.u32 %s1478_s6, 4  ;;  %s837_s8 = sld [smem:[#allocation6 + $0x6]]  ;;  %s288_s16 = int_to_ptr.vmem [resolvable:$true] %s1673_s16 }
  0x74   : > { %s258_s12 = scalar_lea.hbm %s1852_s1, %s835_s25  ;;  %s1479_s18 = smov [#allocation2 + $0x6]  }
  0x75   : > { %s268_s2 = sshll.u32 %s258_s12, 4  ;;  %s1679_s27 = sshll.u32 %s1479_s18, 4  ;;  %s269_s2 = int_to_ptr.hbm [resolvable:$true] %s268_s2  ;;  %s305_s27 = int_to_ptr.vmem [resolvable:$true] %s1679_s27 }
  0x76   : > { %s1079_s7 = sshra.s32 %s269_s2, 4  ;;  %s1080_s7 = int_to_ptr.hbm [resolvable:$true] %s1079_s7 }
  0x77   : > { %s1081_s13 = scalar_lea.hbm %s1080_s7, 1  ;;  %p1084_p0 = scmp.lt.s32.totalorder %s1080_s7, %s1852_s1 }
  0x78   : > { %p1082_p13 = scmp.ne.s32.totalorder %s1080_s7, %s1081_s13  ;;  %p1085_p6 = scmp.lt.s32.totalorder %s1643_s24, %s1081_s13 }
  0x7a   : > { %p1086_p3 = por %p1085_p6, %p1084_p0 }
  0x7c   : > { %p1087_p4 = pnand %p1086_p3, %p1082_p13 }
  0x7e   : > { %1090 = shalt.err (!%p1087_p4)  }
  0x7f   : > { %273 = dma.hbm_to_vmem [thread:$0]  %s269_s2, 16, %s271_s11, [#allocation4 + $0x4] }
  0x80   : > { %s275_s22 = scalar_lea.hbm %s1852_s1, %s836_s26  ;;  %s292_s9 = scalar_lea.hbm %s1852_s1, %s837_s8 }
  0x81   : > { %s285_s21 = sshll.u32 %s275_s22, 4  ;;  %s302_s12 = sshll.u32 %s292_s9, 4  ;;  %s286_s21 = int_to_ptr.hbm [resolvable:$true] %s285_s21  ;;  %s303_s12 = int_to_ptr.hbm [resolvable:$true] %s302_s12 }
  0x82   : > { %s1103_s18 = sshra.s32 %s286_s21, 4  ;;  %s1104_s18 = int_to_ptr.hbm [resolvable:$true] %s1103_s18 }
  0x83   : > { %s1105_s7 = scalar_lea.hbm %s1104_s18, 1  ;;  %p1108_p7 = scmp.lt.s32.totalorder %s1104_s18, %s1852_s1 }
  0x84   : > { %p1106_p5 = scmp.ne.s32.totalorder %s1104_s18, %s1105_s7  ;;  %p1109_p8 = scmp.lt.s32.totalorder %s1643_s24, %s1105_s7 }
  0x86   : > { %p1110_p10 = por %p1109_p8, %p1108_p7 }
  0x88   : > { %p1111_p1 = pnand %p1110_p10, %p1106_p5 }
  0x8a   : > { %1114 = shalt.err (!%p1111_p1)  }
  0x8b   : > { %290 = dma.hbm_to_vmem [thread:$0]  %s286_s21, 16, %s288_s16, [#allocation4 + $0x5] }
  0x8c   : > { %s838_s26 = sld [smem:[#allocation6 + $0x7]]  ;;  %s1127_s8 = sshra.s32 %s303_s12, 4  ;;  %s1128_s8 = int_to_ptr.hbm [resolvable:$true] %s1127_s8 }
  0x8d   : > { %s1129_s2 = scalar_lea.hbm %s1128_s8, 1  ;;  %p1132_p13 = scmp.lt.s32.totalorder %s1128_s8, %s1852_s1 }
  0x8e   : > { %p1130_p2 = scmp.ne.s32.totalorder %s1128_s8, %s1129_s2  ;;  %p1133_p0 = scmp.lt.s32.totalorder %s1643_s24, %s1129_s2 }
  0x90   : > { %p1134_p6 = por %p1133_p0, %p1132_p13 }
  0x92   : > { %p1135_p3 = pnand %p1134_p6, %p1130_p2 }
  0x94   : > { %1138 = shalt.err (!%p1135_p3)  }
  0x95   : > { %307 = dma.hbm_to_vmem [thread:$0]  %s303_s12, 16, %s305_s27, [#allocation4 + $0x6] }
  0x96   : > { %s839_s25 = sld [smem:[#allocation6 + $0x80]]  ;;  %s1480_s15 = smov [#allocation2 + $0x7]  }
  0x97   : > { %s321_s22 = sshll.u32 %s1480_s15, 4  ;;  %s1481_s16 = smov [#allocation2 + $0x8]   ;;  %s322_s22 = int_to_ptr.vmem [resolvable:$true] %s321_s22 }
  0x98   : > { %s1702_s21 = sshll.u32 %s1481_s16, 4  ;;  %s1705_s6 = sld [smem:[#allocation6 + $0x81]]  ;;  %s339_s21 = int_to_ptr.vmem [resolvable:$true] %s1702_s21 }
  0x99   : > { %s309_s18 = scalar_lea.hbm %s1852_s1, %s838_s26  ;;  %s1482_s13 = smov [#allocation2 + $0x9]  }
  0x9a   : > { %s319_s7 = sshll.u32 %s309_s18, 4  ;;  %s1710_s11 = sshll.u32 %s1482_s13, 4  ;;  %s320_s7 = int_to_ptr.hbm [resolvable:$true] %s319_s7  ;;  %s356_s11 = int_to_ptr.vmem [resolvable:$true] %s1710_s11 }
  0x9b   : > { %s1151_s2 = sshra.s32 %s320_s7, 4  ;;  %s1152_s2 = int_to_ptr.hbm [resolvable:$true] %s1151_s2 }
  0x9c   : > { %s326_s8 = scalar_lea.hbm %s1852_s1, %s839_s25  ;;  %s1153_s20 = scalar_lea.hbm %s1152_s2, 1 }
  0x9d   : > { %p1154_p4 = scmp.ne.s32.totalorder %s1152_s2, %s1153_s20  ;;  %p1156_p5 = scmp.lt.s32.totalorder %s1152_s2, %s1852_s1 }
  0x9e   : > { %p1157_p7 = scmp.lt.s32.totalorder %s1643_s24, %s1153_s20 }
  0xa0   : > { %p1158_p8 = por %p1157_p7, %p1156_p5 }
  0xa2   : > { %p1159_p10 = pnand %p1158_p8, %p1154_p4 }
  0xa4   : > { %1162 = shalt.err (!%p1159_p10)  }
  0xa5   : > { %324 = dma.hbm_to_vmem [thread:$0]  %s320_s7, 16, %s322_s22, [#allocation4 + $0x7] }
  0xa6   : > { %s336_s26 = sshll.u32 %s326_s8, 4  ;;  %s343_s29 = scalar_lea.hbm %s1852_s1, %s1705_s6  ;;  %s337_s26 = int_to_ptr.hbm [resolvable:$true] %s336_s26 }
  0xa7   : > { %s1175_s9 = sshra.s32 %s337_s26, 4  ;;  %s1176_s9 = int_to_ptr.hbm [resolvable:$true] %s1175_s9 }
  0xa8   : > { %s1177_s18 = scalar_lea.hbm %s1176_s9, 1  ;;  %p1180_p2 = scmp.lt.s32.totalorder %s1176_s9, %s1852_s1 }
  0xa9   : > { %p1178_p1 = scmp.ne.s32.totalorder %s1176_s9, %s1177_s18  ;;  %p1181_p13 = scmp.lt.s32.totalorder %s1643_s24, %s1177_s18 }
  0xab   : > { %p1182_p0 = por %p1181_p13, %p1180_p2 }
  0xad   : > { %p1183_p6 = pnand %p1182_p0, %p1178_p1 }
  0xaf   : > { %1186 = shalt.err (!%p1183_p6)  }
  0xb0   : > { %341 = dma.hbm_to_vmem [thread:$0]  %s337_s26, 16, %s339_s21, [#allocation4 + $0x8] }
  0xb1   : > { %s353_s22 = sshll.u32 %s343_s29, 4  ;;  %s841_s7 = sld [smem:[#allocation6 + $0x82]]  ;;  %s354_s22 = int_to_ptr.hbm [resolvable:$true] %s353_s22 }
  0xb2   : > { %s1199_s6 = sshra.s32 %s354_s22, 4  ;;  %s1200_s6 = int_to_ptr.hbm [resolvable:$true] %s1199_s6 }
  0xb3   : > { %s1201_s12 = scalar_lea.hbm %s1200_s6, 1  ;;  %p1204_p4 = scmp.lt.s32.totalorder %s1200_s6, %s1852_s1 }
  0xb4   : > { %p1202_p3 = scmp.ne.s32.totalorder %s1200_s6, %s1201_s12  ;;  %p1205_p5 = scmp.lt.s32.totalorder %s1643_s24, %s1201_s12 }
  0xb6   : > { %p1206_p7 = por %p1205_p5, %p1204_p4 }
  0xb8   : > { %p1207_p8 = pnand %p1206_p7, %p1202_p3 }
  0xba   : > { %1210 = shalt.err (!%p1207_p8)  }
  0xbb   : > { %358 = dma.hbm_to_vmem [thread:$0]  %s354_s22, 16, %s356_s11, [#allocation4 + $0x9] }
  0xbc   : > { %s1483_s20 = smov [#allocation2 + $0xa]   ;;  %s842_s15 = sld [smem:[#allocation6 + $0x83]] }
  0xbd   : > { %s372_s28 = sshll.u32 %s1483_s20, 4  ;;  %s1484_s21 = smov [#allocation2 + $0xb]   ;;  %s373_s28 = int_to_ptr.vmem [resolvable:$true] %s372_s28 }
  0xbe   : > { %s1734_s26 = sshll.u32 %s1484_s21, 4  ;;  %s843_s25 = sld [smem:[#allocation6 + $0x84]]  ;;  %s390_s26 = int_to_ptr.vmem [resolvable:$true] %s1734_s26 }
  0xbf   : > { %s360_s9 = scalar_lea.hbm %s1852_s1, %s841_s7  ;;  %s1485_s13 = smov [#allocation2 + $0xc]  }
  0xc0   : > { %s370_s18 = sshll.u32 %s360_s9, 4  ;;  %s1740_s27 = sshll.u32 %s1485_s13, 4  ;;  %s371_s18 = int_to_ptr.hbm [resolvable:$true] %s370_s18  ;;  %s407_s27 = int_to_ptr.vmem [resolvable:$true] %s1740_s27 }
  0xc1   : > { %s1223_s11 = sshra.s32 %s371_s18, 4  ;;  %s1224_s11 = int_to_ptr.hbm [resolvable:$true] %s1223_s11 }
  0xc2   : > { %s1225_s22 = scalar_lea.hbm %s1224_s11, 1  ;;  %p1228_p1 = scmp.lt.s32.totalorder %s1224_s11, %s1852_s1 }
  0xc3   : > { %p1226_p10 = scmp.ne.s32.totalorder %s1224_s11, %s1225_s22  ;;  %p1229_p2 = scmp.lt.s32.totalorder %s1643_s24, %s1225_s22 }
  0xc5   : > { %p1230_p13 = por %p1229_p2, %p1228_p1 }
  0xc7   : > { %p1231_p0 = pnand %p1230_p13, %p1226_p10 }
  0xc9   : > { %1234 = shalt.err (!%p1231_p0)  }
  0xca   : > { %375 = dma.hbm_to_vmem [thread:$0]  %s371_s18, 16, %s373_s28, [#allocation4 + $0xa] }
  0xcb   : > { %s377_s2 = scalar_lea.hbm %s1852_s1, %s842_s15  ;;  %s394_s29 = scalar_lea.hbm %s1852_s1, %s843_s25 }
  0xcc   : > { %s387_s20 = sshll.u32 %s377_s2, 4  ;;  %s404_s9 = sshll.u32 %s394_s29, 4  ;;  %s388_s20 = int_to_ptr.hbm [resolvable:$true] %s387_s20  ;;  %s405_s9 = int_to_ptr.hbm [resolvable:$true] %s404_s9 }
  0xcd   : > { %s1247_s13 = sshra.s32 %s388_s20, 4  ;;  %s1248_s13 = int_to_ptr.hbm [resolvable:$true] %s1247_s13 }
  0xce   : > { %s1249_s11 = scalar_lea.hbm %s1248_s13, 1  ;;  %p1252_p3 = scmp.lt.s32.totalorder %s1248_s13, %s1852_s1 }
  0xcf   : > { %p1250_p6 = scmp.ne.s32.totalorder %s1248_s13, %s1249_s11  ;;  %p1253_p4 = scmp.lt.s32.totalorder %s1643_s24, %s1249_s11 }
  0xd1   : > { %p1254_p5 = por %p1253_p4, %p1252_p3 }
  0xd3   : > { %p1255_p7 = pnand %p1254_p5, %p1250_p6 }
  0xd5   : > { %1258 = shalt.err (!%p1255_p7)  }
  0xd6   : > { %392 = dma.hbm_to_vmem [thread:$0]  %s388_s20, 16, %s390_s26, [#allocation4 + $0xb] }
  0xd7   : > { %s844_s15 = sld [smem:[#allocation6 + $0x85]]  ;;  %s1271_s25 = sshra.s32 %s405_s9, 4  ;;  %s1272_s25 = int_to_ptr.hbm [resolvable:$true] %s1271_s25 }
  0xd8   : > { %s1273_s18 = scalar_lea.hbm %s1272_s25, 1  ;;  %p1276_p10 = scmp.lt.s32.totalorder %s1272_s25, %s1852_s1 }
  0xd9   : > { %p1274_p8 = scmp.ne.s32.totalorder %s1272_s25, %s1273_s18  ;;  %p1277_p1 = scmp.lt.s32.totalorder %s1643_s24, %s1273_s18 }
  0xdb   : > { %p1278_p2 = por %p1277_p1, %p1276_p10 }
  0xdd   : > { %p1279_p13 = pnand %p1278_p2, %p1274_p8 }
  0xdf   : > { %1282 = shalt.err (!%p1279_p13)  }
  0xe0   : > { %409 = dma.hbm_to_vmem [thread:$0]  %s405_s9, 16, %s407_s27, [#allocation4 + $0xc] }
  0xe1   : > { %s845_s7 = sld [smem:[#allocation6 + $0x86]]  ;;  %s1486_s8 = smov [#allocation2 + $0xd]  }
  0xe2   : > { %s423_s2 = sshll.u32 %s1486_s8, 4  ;;  %s1487_s26 = smov [#allocation2 + $0xe]   ;;  %s424_s2 = int_to_ptr.vmem [resolvable:$true] %s423_s2 }
  0xe3   : > { %s1763_s20 = sshll.u32 %s1487_s26, 4  ;;  %s1766_s21 = sld [smem:[#allocation6 + $0x87]]  ;;  %s441_s20 = int_to_ptr.vmem [resolvable:$true] %s1763_s20 }
  0xe4   : > { %s411_s13 = scalar_lea.hbm %s1852_s1, %s844_s15  ;;  %s1488_s22 = smov [#allocation2 + $0xf]  }
  0xe5   : > { %s421_s11 = sshll.u32 %s411_s13, 4  ;;  %s1771_s28 = sshll.u32 %s1488_s22, 4  ;;  %s422_s11 = int_to_ptr.hbm [resolvable:$true] %s421_s11  ;;  %s458_s28 = int_to_ptr.vmem [resolvable:$true] %s1771_s28 }
  0xe6   : > { %s1295_s18 = sshra.s32 %s422_s11, 4  ;;  %s1296_s18 = int_to_ptr.hbm [resolvable:$true] %s1295_s18 }
  0xe7   : > { %s428_s25 = scalar_lea.hbm %s1852_s1, %s845_s7  ;;  %s1297_s6 = scalar_lea.hbm %s1296_s18, 1 }
  0xe8   : > { %p1298_p0 = scmp.ne.s32.totalorder %s1296_s18, %s1297_s6  ;;  %p1300_p6 = scmp.lt.s32.totalorder %s1296_s18, %s1852_s1 }
  0xe9   : > { %p1301_p3 = scmp.lt.s32.totalorder %s1643_s24, %s1297_s6 }
  0xeb   : > { %p1302_p4 = por %p1301_p3, %p1300_p6 }
  0xed   : > { %p1303_p5 = pnand %p1302_p4, %p1298_p0 }
  0xef   : > { %1306 = shalt.err (!%p1303_p5)  }
  0xf0   : > { %426 = dma.hbm_to_vmem [thread:$0]  %s422_s11, 16, %s424_s2, [#allocation4 + $0xd] }
  0xf1   : > { %s438_s15 = sshll.u32 %s428_s25, 4  ;;  %s445_s16 = scalar_lea.hbm %s1852_s1, %s1766_s21  ;;  %s439_s15 = int_to_ptr.hbm [resolvable:$true] %s438_s15 }
  0xf2   : > { %s1319_s29 = sshra.s32 %s439_s15, 4  ;;  %s1320_s29 = int_to_ptr.hbm [resolvable:$true] %s1319_s29 }
  0xf3   : > { %s1321_s13 = scalar_lea.hbm %s1320_s29, 1  ;;  %p1324_p8 = scmp.lt.s32.totalorder %s1320_s29, %s1852_s1 }
  0xf4   : > { %p1322_p7 = scmp.ne.s32.totalorder %s1320_s29, %s1321_s13  ;;  %p1325_p10 = scmp.lt.s32.totalorder %s1643_s24, %s1321_s13 }
  0xf6   : > { %p1326_p1 = por %p1325_p10, %p1324_p8 }
  0xf8   : > { %p1327_p2 = pnand %p1326_p1, %p1322_p7 }
  0xfa   : > { %1330 = shalt.err (!%p1327_p2)  }
  0xfb   : > { %443 = dma.hbm_to_vmem [thread:$0]  %s439_s15, 16, %s441_s20, [#allocation4 + $0xe] }
  0xfc   : > { %s455_s2 = sshll.u32 %s445_s16, 4  ;;  %s456_s2 = int_to_ptr.hbm [resolvable:$true] %s455_s2 }
  0xfd   : > { %s1343_s11 = sshra.s32 %s456_s2, 4  ;;  %s1344_s11 = int_to_ptr.hbm [resolvable:$true] %s1343_s11 }
  0xfe   : > { %s1345_s21 = scalar_lea.hbm %s1344_s11, 1  ;;  %p1348_p0 = scmp.lt.s32.totalorder %s1344_s11, %s1852_s1 }
  0xff   : > { %p1346_p13 = scmp.ne.s32.totalorder %s1344_s11, %s1345_s21  ;;  %p1349_p6 = scmp.lt.s32.totalorder %s1643_s24, %s1345_s21 }
 0x101   : > { %p1350_p3 = por %p1349_p6, %p1348_p0 }
 0x103   : > { %p1351_p4 = pnand %p1350_p3, %p1346_p13 }
 0x105   : > { %1354 = shalt.err (!%p1351_p4)  }
 0x106   : > { %460 = dma.hbm_to_vmem [thread:$0]  %s456_s2, 16, %s458_s28, [#allocation4 + $0xf] }
 0x107   : > { %1417 = dma.done.wait [#allocation4], 16 }
 0x108   : > { %1418 = vsyncadd [#allocation4], 4294967280 }
 0x109   : > { %1419 = dma.done.wait [#allocation4 + $0x1], 16 }
 0x10a   : > { %1420 = vsyncadd [#allocation4 + $0x1], 4294967280 }
 0x10b   : > { %1421 = dma.done.wait [#allocation4 + $0x2], 16 }
 0x10c   : > { %1422 = vsyncadd [#allocation4 + $0x2], 4294967280 }
 0x10d   : > { %1423 = dma.done.wait [#allocation4 + $0x3], 16 }
 0x10e   : > { %1424 = vsyncadd [#allocation4 + $0x3], 4294967280 }
 0x10f   : > { %1425 = dma.done.wait [#allocation4 + $0x4], 16 }
 0x110   : > { %1426 = vsyncadd [#allocation4 + $0x4], 4294967280 }
 0x111   : > { %1427 = dma.done.wait [#allocation4 + $0x5], 16 }
 0x112   : > { %1428 = vsyncadd [#allocation4 + $0x5], 4294967280 }
 0x113   : > { %1429 = dma.done.wait [#allocation4 + $0x6], 16 }
 0x114   : > { %1430 = vsyncadd [#allocation4 + $0x6], 4294967280 }
 0x115   : > { %1431 = dma.done.wait [#allocation4 + $0x7], 16 }
 0x116   : > { %1432 = vsyncadd [#allocation4 + $0x7], 4294967280 }
 0x117   : > { %1433 = dma.done.wait [#allocation4 + $0x8], 16 }
 0x118   : > { %1434 = vsyncadd [#allocation4 + $0x8], 4294967280 }
 0x119   : > { %1435 = dma.done.wait [#allocation4 + $0x9], 16 }
 0x11a   : > { %1436 = vsyncadd [#allocation4 + $0x9], 4294967280 }
 0x11b   : > { %1437 = dma.done.wait [#allocation4 + $0xa], 16 }
 0x11c   : > { %1438 = vsyncadd [#allocation4 + $0xa], 4294967280 }
 0x11d   : > { %1439 = dma.done.wait [#allocation4 + $0xb], 16 }
 0x11e   : > { %1440 = vsyncadd [#allocation4 + $0xb], 4294967280 }
 0x11f   : > { %1441 = dma.done.wait [#allocation4 + $0xc], 16 }
 0x120   : > { %1442 = vsyncadd [#allocation4 + $0xc], 4294967280 }
 0x121   : > { %1443 = dma.done.wait [#allocation4 + $0xd], 16 }
 0x122   : > { %1444 = vsyncadd [#allocation4 + $0xd], 4294967280 }
 0x123   : > { %1445 = dma.done.wait [#allocation4 + $0xe], 16 }
 0x124   : > { %1446 = vsyncadd [#allocation4 + $0xe], 4294967280 }
 0x125   : > { %1447 = dma.done.wait [#allocation4 + $0xf], 16 }
 0x126   : > { %1448 = vsyncadd [#allocation4 + $0xf], 4294967280  ;;  %v494_v0 = vld [vmem:[#allocation2] sm:$0xff]  ;;  %v495_v2 = vld [vmem:[#allocation2 + $0x8] sm:$0xff]  ;;  %v1489_v15 = vmov 8.0   ;;  %vm555_vm9 = vcmask 1041409  }
 0x127   : > { %v496_v1 = vmul.f32 %v494_v0, %v494_v0  ;;  %v497_v3 = vmul.f32 %v495_v2, %v495_v2 }
 0x129   : > { %498 = vadd.xlane.f32.xlu0 %v496_v1 }
 0x131   : > { %500 = vadd.xlane.f32.xlu0 %v497_v3 }
 0x19c   : > { %v499_v4 = vpop.xlane.xlu0 %498 }
 0x19d   : > { %v504_v5 = vmax.f32 %v499_v4, 1e-12  ;;  %vm502_vm3 = vcmp.gt.f32.partialorder %v499_v4, 25.0 }
 0x19f   : > { %934 = vrsqrt.f32 %v504_v5  ;;  %vm512_vm1 = vweird.f32 %v504_v5 }
 0x1a4   : > { %v501_v6 = vpop.xlane.xlu0 %500 }
 0x1a5   : > { %v935_v7 = vpop.eup %934  ;;  %v505_v8 = vmax.f32 %v501_v6, 1e-12  ;;  %vm503_vm7 = vcmp.gt.f32.partialorder %v501_v6, 25.0 }
 0x1a6   : > { %v507_v9 = vmul.f32 %v935_v7, %v504_v5  ;;  %vm513_vm0 = vweird.f32 %v935_v7 }
 0x1a7   : > { %936 = vrsqrt.f32 %v505_v8  ;;  %vm514_vm2 = vmor %vm512_vm1, %vm513_vm0  ;;  %vm522_vm5 = vweird.f32 %v505_v8 }
 0x1a8   : > { %v508_v10 = vmul.f32 %v935_v7, %v507_v9  ;;  %938 = vrcp.f32 %v1489_v15 }
 0x1aa   : > { %v509_v11 = vmul.f32 0.5, %v508_v10 }
 0x1ac   : > { %v510_v12 = vsub.f32 1.5, %v509_v11 }
 0x1ad   : > { %v937_v13 = vpop.eup %936 }
 0x1ae   : > { %v511_v14 = vmul.f32 %v935_v7, %v510_v12  ;;  %v517_v16 = vmul.f32 %v937_v13, %v505_v8  ;;  %v939_v22 = vpop.eup %938  ;;  %vm523_vm4 = vweird.f32 %v937_v13 }
 0x1af   : > { %v545_v27 = vmul.f32 8.0, %v939_v22  ;;  %vm524_vm6 = vmor %vm522_vm5, %vm523_vm4  ;;  %vm549_vm8 = vweird.f32 %v939_v22 }
 0x1b0   : > { %v515_v17 = vsel %vm514_vm2, %v935_v7, %v511_v14  ;;  %v518_v18 = vmul.f32 %v937_v13, %v517_v16 }
 0x1b1   : > { %v526_v19 = vmul.f32 5.0, %v515_v17  ;;  %v546_v32 = vsub.f32 1.0, %v545_v27 }
 0x1b2   : > { %v519_v20 = vmul.f32 0.5, %v518_v18 }
 0x1b3   : > { %v528_v21 = vsel %vm502_vm3, %v526_v19, 1.0  ;;  %v547_v37 = vmul.f32 %v939_v22, %v546_v32 }
 0x1b4   : > { %v530_v23 = vmul.f32 %v528_v21, %v494_v0  ;;  %v520_v24 = vsub.f32 1.5, %v519_v20 }
 0x1b5   : > { %v548_v41 = vadd.f32 %v939_v22, %v547_v37 }
 0x1b6   : > { %v532_v25 = vrot.slane %v530_v23, 4  ;;  %v521_v26 = vmul.f32 %v937_v13, %v520_v24 }
 0x1b7   : > { %v550_v45 = vsel %vm549_vm8, %v939_v22, %v548_v41 }
 0x1b8   : > { %v533_v28 = vadd.f32 %v532_v25, %v530_v23  ;;  %v525_v29 = vsel %vm524_vm6, %v937_v13, %v521_v26 }
 0x1b9   : > { %v527_v30 = vmul.f32 5.0, %v525_v29 }
 0x1ba   : > { %v534_v31 = vrot.slane %v533_v28, 2 }
 0x1bb   : > { %v529_v33 = vsel %vm503_vm7, %v527_v30, 1.0 }
 0x1bc   : > { %v531_v34 = vmul.f32 %v529_v33, %v495_v2  ;;  %v535_v35 = vadd.f32 %v534_v31, %v533_v28 }
 0x1be   : > { %v538_v36 = vrot.slane %v531_v34, 4  ;;  %v536_v39 = vrot.slane %v535_v35, 1 }
 0x1c0   : > { %v539_v38 = vadd.f32 %v538_v36, %v531_v34  ;;  %v537_v43 = vadd.f32 %v536_v39, %v535_v35 }
 0x1c2   : > { %v540_v40 = vrot.slane %v539_v38, 2  ;;  %v551_v47 = vmul.f32 %v550_v45, %v537_v43 }
 0x1c4   : > { %v541_v42 = vadd.f32 %v540_v40, %v539_v38 }
 0x1c6   : > { %v542_v44 = vrot.slane %v541_v42, 1 }
 0x1c8   : > { %v543_v46 = vadd.f32 %v542_v44, %v541_v42 }
 0x1ca   : > { %v552_v48 = vmul.f32 %v550_v45, %v543_v46 }
 0x1cc   : > { %v556_v49 = vsel %vm555_vm9, %v552_v48, %v551_v47 }
 0x1cd   : > { %558 = vst [vmem:[#allocation3] sm:$0x3] %v556_v49 }
 0x1ce PF: > { %v575_v50 = vld [vmem:[%s1606_s17 + $0x78] sm:$0xff]  ;;  %v574_v51 = vld [vmem:[%s1606_s17 + $0x70] sm:$0xff]  ;;  %v573_v52 = vld [vmem:[%s1606_s17 + $0x68] sm:$0xff]  ;;  %s848_s24 = sshll.u32 %s1539_s0, 1  ;;  %s1877_s8 = scalar_lea.vmem %s1854_s3, %s1615_s14 }
 0x1cf   : > { %580 = vmatpush.msra.mxu0 %v575_v50  ;;  %v572_v53 = vld [vmem:[%s1606_s17 + $0x60] sm:$0xff]  ;;  %v571_v54 = vld [vmem:[%s1606_s17 + $0x58] sm:$0xff]  ;;  %v570_v55 = vld [vmem:[%s1606_s17 + $0x50] sm:$0xff]  ;;  %s612_s18 = scalar_lea.hbm %s1855_s4, %s848_s24  ;;  %s614_s15 = sshll.u32 %s1621_s23, 4  ;;  %s615_s15 = int_to_ptr.vmem [resolvable:$true] %s614_s15 }
 0x1d0   : > { %v569_v56 = vld [vmem:[%s1606_s17 + $0x48] sm:$0xff]  ;;  %v568_v57 = vld [vmem:[%s1606_s17 + $0x40] sm:$0xff]  ;;  %v567_v58 = vld [vmem:[%s1606_s17 + $0x38] sm:$0xff]  ;;  %s616_s7 = sshll.u32 %s612_s18, 4  ;;  %s1387_s14 = scalar_lea.hbm %s1855_s4, 4  ;;  %s617_s7 = int_to_ptr.hbm [resolvable:$true] %s616_s7 }
 0x1d1   : > { %581 = vmatpush.msra.mxu0 %v574_v51  ;;  %v566_v59 = vld [vmem:[%s1606_s17 + $0x30] sm:$0xff]  ;;  %v565_v60 = vld [vmem:[%s1606_s17 + $0x28] sm:$0xff]  ;;  %v564_v61 = vld [vmem:[%s1606_s17 + $0x20] sm:$0xff]  ;;  %s1381_s26 = sshra.s32 %s617_s7, 4  ;;  %s1382_s26 = int_to_ptr.hbm [resolvable:$true] %s1381_s26 }
 0x1d2   : > { %v563_v62 = vld [vmem:[%s1606_s17 + $0x18] sm:$0xff]  ;;  %v562_v63 = vld [vmem:[%s1606_s17 + $0x10] sm:$0xff]  ;;  %v561_v0 = vld [vmem:[%s1606_s17 + $0x8] sm:$0xff]  ;;  %s1383_s0 = scalar_lea.hbm %s1382_s26, 2  ;;  %p1388_p10 = scmp.lt.s32.totalorder %s1382_s26, %s1855_s4 }
 0x1d3   : > { %582 = vmatpush.msra.mxu0 %v573_v52  ;;  %v560_v1 = vld [vmem:[%s1606_s17] sm:$0xff]  ;;  %v940_v3 = vld [vmem:[%s1877_s8] ss:$0 sm:$0xff]  ;;  %s602_s17 = scalar_lea.sflag [#allocation9], %s1602_s10  ;;  %p1384_p5 = scmp.ne.s32.totalorder %s1382_s26, %s1383_s0 }
 0x1d4   : > { %v559_v2 = vld [vmem:[#allocation3] sm:$0x3]  ;;  %p1389_p1 = scmp.lt.s32.totalorder %s1387_s14, %s1383_s0 }
 0x1d5   : > { %583 = vmatpush.msra.mxu0 %v572_v53  ;;  %p1385_p7 = pnand %p1384_p5, %p1568_p11 }
 0x1d6   : > { %p1390_p2 = por %p1389_p1, %p1388_p10 }
 0x1d7   : > { %584 = vmatpush.msra.mxu0 %v571_v54  ;;  %p1386_p8 = pneg %p1385_p7 }
 0x1d9   : > { %585 = vmatpush.msra.mxu0 %v570_v55  ;;  %p1391_p13 = pnand %p1390_p2, %p1386_p8 }
 0x1db   : > { %586 = vmatpush.msra.mxu0 %v569_v56 }
 0x1dd   : > { %587 = vmatpush.msra.mxu0 %v568_v57 }
 0x1df   : > { %588 = vmatpush.msra.mxu0 %v567_v58 }
 0x1e1   : > { %589 = vmatpush.msra.mxu0 %v566_v59 }
 0x1e3   : > { %590 = vmatpush.msra.mxu0 %v565_v60 }
 0x1e5   : > { %591 = vmatpush.msra.mxu0 %v564_v61 }
 0x1e7   : > { %592 = vmatpush.msra.mxu0 %v563_v62 }
 0x1e9   : > { %593 = vmatpush.msra.mxu0 %v562_v63 }
 0x1eb   : > { %594 = vmatpush.msra.mxu0 %v561_v0 }
 0x1ed   : > { %595 = vmatpush.msra.mxu0 %v560_v1 }
 0x1ee   : > { %596 = vmatmul.f32.vlgmr.msra.gmra.mxu0 %v559_v2 }
 0x26b   : > { %v597_v4 = vpop.f32.mrf.mxu0 }
 0x26c   : > { %v598_v5 = vadd.f32 %v940_v3, %v597_v4 }
 0x26e   : > { %600 = vst [vmem:[%s1621_s23] sm:$0x3] %v598_v5 }
 0x26f   : > { %1394 = shalt.err (!%p1391_p13)
}
 0x270   : > { %869 = dma.vmem_to_hbm [thread:$0]  (%p1568_p11), %s615_s15, 32, %s617_s7, %s602_s17  }
 0x271 PF: > { %s628_s23 = sand.u32 1, %s1455_s19   ;;  %p876_p0 = pnand %p825_p9, %p1572_p12 }
 0x272   : > { %s629_s27 = scalar_lea.sflag [#allocation9], %s628_s23 }
 0x273   : > { %p877_p6 = pneg %p876_p0 }
 0x275   : > { %1450 = dma.done.wait (%p877_p6), %s629_s27, 32  }
 0x276   : > { %1452 = vsyncadd (%p877_p6), %s629_s27, 4294967264  ;;  %s1879_s22 = sld [smem:[#allocation67_spill]] }
 0x277   : > { %s1880_s19 = sld [smem:[#allocation64_spill]] }
 0x278   : > { %s1881_s20 = sld [smem:[#allocation65_spill]] }
 0x279   : > { %s1882_s21 = sld [smem:[#allocation68_spill]] }
 0x27c   : > { %p25_p3 = scmp.ge.s32.totalorder %s1879_s22, 4  }
 0x27e   :  { %27 = sbr.rel (!%p25_p3) target bundleno = 11 (0xb), region = 205 }
 0x283   :  { %635 = vsyncpa [#allocation8], 1 }
 0x284   :  { %637 = vsyncpa [#allocation8 + $0x1], 1 }
 0x285   :  { %638 = vsyncpa [#allocation9], 1 }
 0x286   :  { %640 = vsyncpa [#allocation9 + $0x1], 1 }
 0x287   :  { %641 = vsyncmov [#allocation4] }
 0x28a   :  { %s642_s30 = vpop.sfrf %641 }
 0x28b   :  { %p851_p9 = scmp.ne.s32.totalorder %s642_s30, 0 }
 0x28d   :  { %646 = shalt.err (%p851_p9)  }
 0x28e   :  { %648 = vsyncmov [#allocation4 + $0x1] }
 0x291   :  { %s649_s5 = vpop.sfrf %648 }
 0x292   :  { %p852_p11 = scmp.ne.s32.totalorder %s649_s5, 0 }
 0x294   :  { %653 = shalt.err (%p852_p11)  }
 0x295   :  { %655 = vsyncmov [#allocation4 + $0x2] }
 0x298   :  { %s656_s2 = vpop.sfrf %655 }
 0x299   :  { %p853_p12 = scmp.ne.s32.totalorder %s656_s2, 0 }
 0x29b   :  { %660 = shalt.err (%p853_p12)  }
 0x29c   :  { %662 = vsyncmov [#allocation4 + $0x3] }
 0x29f   :  { %s663_s11 = vpop.sfrf %662 }
 0x2a0   :  { %p854_p4 = scmp.ne.s32.totalorder %s663_s11, 0 }
 0x2a2   :  { %667 = shalt.err (%p854_p4)  }
 0x2a3   :  { %669 = vsyncmov [#allocation4 + $0x4] }
 0x2a6   :  { %s670_s1 = vpop.sfrf %669 }
 0x2a7   :  { %p855_p5 = scmp.ne.s32.totalorder %s670_s1, 0 }
 0x2a9   :  { %674 = shalt.err (%p855_p5)  }
 0x2aa   :  { %676 = vsyncmov [#allocation4 + $0x5] }
 0x2ad   :  { %s677_s3 = vpop.sfrf %676 }
 0x2ae   :  { %p856_p7 = scmp.ne.s32.totalorder %s677_s3, 0 }
 0x2b0   :  { %681 = shalt.err (%p856_p7)  }
 0x2b1   :  { %683 = vsyncmov [#allocation4 + $0x6] }
 0x2b4   :  { %s684_s4 = vpop.sfrf %683 }
 0x2b5   :  { %p857_p8 = scmp.ne.s32.totalorder %s684_s4, 0 }
 0x2b7   :  { %688 = shalt.err (%p857_p8)  }
 0x2b8   :  { %690 = vsyncmov [#allocation4 + $0x7] }
 0x2bb   :  { %s691_s19 = vpop.sfrf %690 }
 0x2bc   :  { %p858_p10 = scmp.ne.s32.totalorder %s691_s19, 0 }
 0x2be   :  { %695 = shalt.err (%p858_p10)  }
 0x2bf   :  { %697 = vsyncmov [#allocation4 + $0x8] }
 0x2c2   :  { %s698_s21 = vpop.sfrf %697 }
 0x2c3   :  { %p859_p1 = scmp.ne.s32.totalorder %s698_s21, 0 }
 0x2c5   :  { %702 = shalt.err (%p859_p1)  }
 0x2c6   :  { %704 = vsyncmov [#allocation4 + $0x9] }
 0x2c9   :  { %s705_s9 = vpop.sfrf %704 }
 0x2ca   :  { %p860_p2 = scmp.ne.s32.totalorder %s705_s9, 0 }
 0x2cc   :  { %709 = shalt.err (%p860_p2)  }
 0x2cd   :  { %711 = vsyncmov [#allocation4 + $0xa] }
 0x2d0   :  { %s712_s25 = vpop.sfrf %711 }
 0x2d1   :  { %p861_p13 = scmp.ne.s32.totalorder %s712_s25, 0 }
 0x2d3   :  { %716 = shalt.err (%p861_p13)  }
 0x2d4   :  { %718 = vsyncmov [#allocation4 + $0xb] }
 0x2d7   :  { %s719_s24 = vpop.sfrf %718 }
 0x2d8   :  { %p862_p0 = scmp.ne.s32.totalorder %s719_s24, 0 }
 0x2da   :  { %723 = shalt.err (%p862_p0)  }
 0x2db   :  { %725 = vsyncmov [#allocation4 + $0xc] }
 0x2de   :  { %s726_s20 = vpop.sfrf %725 }
 0x2df   :  { %p863_p6 = scmp.ne.s32.totalorder %s726_s20, 0 }
 0x2e1   :  { %730 = shalt.err (%p863_p6)  }
 0x2e2   :  { %732 = vsyncmov [#allocation4 + $0xd] }
 0x2e5   :  { %s733_s28 = vpop.sfrf %732 }
 0x2e6   :  { %p864_p3 = scmp.ne.s32.totalorder %s733_s28, 0 }
 0x2e8   :  { %737 = shalt.err (%p864_p3)  }
 0x2e9   :  { %739 = vsyncmov [#allocation4 + $0xe] }
 0x2ec   :  { %s740_s18 = vpop.sfrf %739 }
 0x2ed   :  { %p865_p9 = scmp.ne.s32.totalorder %s740_s18, 0 }
 0x2ef   :  { %744 = shalt.err (%p865_p9)  }
 0x2f0   :  { %746 = vsyncmov [#allocation4 + $0xf] }
 0x2f3   :  { %s747_s6 = vpop.sfrf %746 }
 0x2f4   :  { %p866_p11 = scmp.ne.s32.totalorder %s747_s6, 0 }
 0x2f6   :  { %751 = shalt.err (%p866_p11)  }

</bundles_post_ra>
